<compile_context>
chip_gen: v6e
topology: v6e:2x2x1
jax: 0.10.0
libtpu: 0.0.40
codegen_flags: <defaults>
</compile_context>

<pallas_src>
import functools
import math

import jax
import jax.numpy as jnp
from jax import lax
from jax.experimental import pallas as pl
from jax.experimental.pallas import tpu as pltpu


# Row order of the packed per-layer small-vector table (L, 10, P).
_VEC_ROWS = ('bq', 'bk', 'bv', 'bo', 'g1', 'be1', 'b1', 'b2', 'g2', 'be2')


# ----------------------------- in-kernel helpers -----------------------------

def _layernorm(x, gamma, beta, eps=1e-5):
    mu = jnp.mean(x, axis=-1, keepdims=True)
    var = jnp.mean((x - mu) ** 2, axis=-1, keepdims=True)
    return (x - mu) * lax.rsqrt(var + eps) * gamma + beta


# ------------------------------- Pallas kernel --------------------------------

def _decoder_kernel(emb_ref, cos_ref, sin_ref,
                    wq_ref, wk_ref, wv_ref, wo_ref, w1_ref, w2_ref, vec_ref,
                    o_ref, x_state, mask_ref, *, n_heads):
    """One grid step == one decoder layer over the WHOLE batch.

    x_state (VMEM scratch, (B*S, D) f32) is the activation carried across layers;
    mask_ref (VMEM scratch, (S, S) f32) is the causal additive bias built once."""
    layer = pl.program_id(0)
    n_layers = pl.num_programs(0)
    B, S, D = emb_ref.shape
    N = B * S
    H = n_heads
    dk = D // H
    F = w1_ref.shape[-1]
    half = D // 2
    scale = jnp.float32(1.0 / math.sqrt(dk))

    # ---- layer-0 prologue: embedding scale + RoPE + causal bias, computed once ----
    @pl.when(layer == 0)
    def _():
        e = emb_ref[...] * jnp.float32(math.sqrt(D))          # Embeddings: lookup*sqrt(D)
        x1 = e[..., :half]
        x2 = e[..., half:]
        c = cos_ref[...]                                      # (S, half)
        sn = sin_ref[...]                                     # (S, half)
        # rotate-half RoPE: no (D,D) permutation matrix, no MXU work.
        rot = jnp.concatenate([x1 * c - x2 * sn, x2 * c + x1 * sn], axis=-1)
        x_state[...] = rot.reshape(N, D)
        # mask_subsequence: causal additive bias, built once, reused every layer.
        rows = lax.broadcasted_iota(jnp.int32, (S, S), 0)
        cols = lax.broadcasted_iota(jnp.int32, (S, S), 1)
        mask_ref[...] = jnp.where(rows >= cols, jnp.float32(0.0), jnp.float32(-1e9))

    x = x_state[...]                                          # (N, D) f32, VMEM-resident
    xb = x.astype(jnp.bfloat16)
    vec = vec_ref[0]                                          # (10, P) packed vectors
    bias = mask_ref[...]                                      # (S, S) additive causal bias

    # ---- masked multi-head self-attention (bf16 MXU operands, f32 accumulate) ----
    # Heads and batch are statically unrolled 2-D MXU dots (B=2, H=4, dk=8): at
    # these shapes batched 3-D dots / head-batched einsum cost more in relayouts
    # than they save.  For production dk >= 128 put heads on the grid / use einsum.
    acc = [jnp.zeros((S, D), jnp.float32) for _ in range(B)]
    for h in range(H):
        lo, hi = h * dk, (h + 1) * dk
        # per-head projections: whole tile-aligned head blocks (no lane slicing)
        qh = (jnp.dot(xb, wq_ref[0, h], preferred_element_type=jnp.float32)
              + vec[0:1, lo:hi]) * scale                      # scale folded into q
        kh = jnp.dot(xb, wk_ref[0, h], preferred_element_type=jnp.float32) + vec[1:2, lo:hi]
        vh = jnp.dot(xb, wv_ref[0, h], preferred_element_type=jnp.float32) + vec[2:3, lo:hi]
        for b in range(B):
            r = slice(b * S, (b + 1) * S)                     # sublane-aligned row block
            qb = qh[r].astype(jnp.bfloat16)                   # (S, dk)
            kb = kh[r].astype(jnp.bfloat16)
            vb = vh[r].astype(jnp.bfloat16)
            # q @ k^T as contract-on-last dot_general (no XLU transpose)
            s = lax.dot_general(qb, kb, (((1,), (1,)), ((), ())),
                                preferred_element_type=jnp.float32)     # (S, S)
            s = s + bias
            s = s - jnp.max(s, axis=-1, keepdims=True)
            p = jnp.exp(s)
            p = p / jnp.sum(p, axis=-1, keepdims=True)        # exact normalize
            ctx = jnp.dot(p.astype(jnp.bfloat16), vb,
                          preferred_element_type=jnp.float32)           # (S, dk)
            # fused output projection: accumulate ctx_h @ Wo_head (no concat)
            acc[b] = acc[b] + jnp.dot(ctx.astype(jnp.bfloat16), wo_ref[0, h],
                                      preferred_element_type=jnp.float32)
    attn = jnp.concatenate(acc, axis=0) + vec[3:4, :D]        # (N, D)

    y = _layernorm(x + attn, vec[4:5, :D], vec[5:6, :D])

    # ---- feed-forward (Linear -> ReLU -> Linear), residual + LayerNorm ----
    yb = y.astype(jnp.bfloat16)
    h1 = jnp.maximum(
        jnp.dot(yb, w1_ref[0], preferred_element_type=jnp.float32) + vec[6:7, :F], 0.0)
    ff = jnp.dot(h1.astype(jnp.bfloat16), w2_ref[0],
                 preferred_element_type=jnp.float32) + vec[7:8, :D]
    x_new = _layernorm(y + ff, vec[8:9, :D], vec[9:10, :D])

    x_state[...] = x_new                                      # carry to next layer

    @pl.when(layer == n_layers - 1)                           # single HBM store at the end
    def _():
        o_ref[...] = x_new.reshape(B, S, D)


def decoder_pallas(emb, cos, sin, lw, n_heads):
    """Run the full decoder stack in one pallas_call with grid=(n_layers,)."""
    B, S, D = emb.shape
    L = lw['wq'].shape[0]
    layer_arrays = [lw[k] for k in ('wq', 'wk', 'wv', 'wo', 'w1', 'w2', 'vec')]

    def const_spec(a):                 # constants: fetched once (block index fixed)
        n = a.ndim
        return pl.BlockSpec(a.shape, lambda l, n=n: (0,) * n)

    def layer_spec(a):                 # layer-l weights, prefetched while l-1 computes
        n = a.ndim
        return pl.BlockSpec((1,) + a.shape[1:], lambda l, n=n: (l,) + (0,) * (n - 1))

    in_specs = ([const_spec(emb), const_spec(cos), const_spec(sin)]
                + [layer_spec(a) for a in layer_arrays])

    # VMEM limit sized from the actual footprint (double-buffered layer blocks +
    # resident constants + output + scratch) with 4x headroom, capped at 32 MiB
    # (never the full 64 MiB of a v7x TensorCore).
    per_layer_bytes = sum(math.prod(a.shape[1:]) * a.dtype.itemsize for a in layer_arrays)
    resident_bytes = sum(math.prod(a.shape) * a.dtype.itemsize for a in (emb, cos, sin))
    out_bytes = B * S * D * 4
    scratch_bytes = (B * S * D + S * S) * 4
    need = 2 * per_layer_bytes + 2 * resident_bytes + 2 * out_bytes + scratch_bytes
    vmem_limit = int(min(32 << 20, max(16 << 20, 4 * need)))

    return pl.pallas_call(
        functools.partial(_decoder_kernel, n_heads=n_heads),
        out_shape=jax.ShapeDtypeStruct((B, S, D), jnp.float32),
        grid_spec=pltpu.PrefetchScalarGridSpec(
            num_scalar_prefetch=0,
            grid=(L,),                                   # one step per layer, weights fetched once
            in_specs=in_specs,
            out_specs=pl.BlockSpec((B, S, D), lambda l: (0, 0, 0)),
            scratch_shapes=[pltpu.VMEM((B * S, D), jnp.float32),   # carried activation
                            pltpu.VMEM((S, S), jnp.float32)],      # causal additive bias
        ),
        compiler_params=pltpu.CompilerParams(
            dimension_semantics=("arbitrary",),
            vmem_limit_bytes=vmem_limit,
        ),
    )(emb, cos, sin, *layer_arrays)


# --------------------------------- glue (JAX) ---------------------------------

def rope_constants(S, D):
    """cos/sin tables for rotate-half RoPE, shape (S, D//2) each."""
    half = D // 2
    inv_freq = 1.0 / (10000.0 ** (jnp.arange(half, dtype=jnp.float32) * 2.0 / D))
    ang = jnp.arange(S, dtype=jnp.float32)[:, None] * inv_freq[None, :]
    return jnp.cos(ang), jnp.sin(ang)


def pack_layer_params(layers, n_heads):
    """Stack per-layer params along L; pre-split heads; pack small vectors."""
    L = len(layers)
    D = layers[0]['wq'].shape[0]
    F = layers[0]['w1'].shape[1]
    dk = D // n_heads
    P = max(D, F)

    def stack(key):
        return jnp.stack([lp[key] for lp in layers], axis=0)

    # Per-head pre-split weights: head blocks indexed along a leading axis in the
    # kernel (no sub-tile lane/sublane slices per head).
    wq = stack('wq').reshape(L, D, n_heads, dk).transpose(0, 2, 1, 3)   # (L,H,D,dk)
    wk = stack('wk').reshape(L, D, n_heads, dk).transpose(0, 2, 1, 3)
    wv = stack('wv').reshape(L, D, n_heads, dk).transpose(0, 2, 1, 3)
    wo = stack('wo').reshape(L, n_heads, dk, D)                         # (L,H,dk,D)
    w1 = stack('w1')                                                    # (L,D,F)
    w2 = stack('w2')                                                    # (L,F,D)

    def pad_row(v):                                                     # (L,n) -> (L,P)
        return jnp.pad(v, ((0, 0), (0, P - v.shape[1])))

    vec = jnp.stack([pad_row(stack(k)) for k in _VEC_ROWS], axis=1)     # (L,10,P)

    cast = lambda w: w.astype(jnp.bfloat16)        # bf16 MXU operands, f32 accumulation
    return {'wq': cast(wq), 'wk': cast(wk), 'wv': cast(wv), 'wo': cast(wo),
            'w1': cast(w1), 'w2': cast(w2), 'vec': vec.astype(jnp.float32)}


def decoder_forward(tokens, params, n_heads):
    emb_table = params['emb']                       # (vocab, D)
    D = emb_table.shape[1]
    assert D % 2 == 0 and D % n_heads == 0
    # Embedding gather stays in plain JAX glue (data-dependent gather, tiny table);
    # the sqrt(D) scale and RoPE are fused into the kernel's layer-0 prologue.
    x = jnp.take(emb_table, tokens, axis=0)         # (B, S, D)
    S = x.shape[1]
    cos, sin = rope_constants(S, D)
    lw = pack_layer_params(params['layers'], n_heads)
    return decoder_pallas(x, cos, sin, lw, n_heads)


# ------------------------------ param construction -----------------------------

def init_params(key, vocab, emb_dim, ff_dim, n_layers):
    keys = jax.random.split(key, 1 + n_layers)
    params = {'emb': jax.random.normal(keys[0], (vocab, emb_dim), jnp.float32) * 0.02,
              'layers': []}
    for li in range(n_layers):
        ks = jax.random.split(keys[1 + li], 6)
        D, F = emb_dim, ff_dim
        lp = {
            'wq': jax.random.normal(ks[0], (D, D), jnp.float32) * 0.02,
            'wk': jax.random.normal(ks[1], (D, D), jnp.float32) * 0.02,
            'wv': jax.random.normal(ks[2], (D, D), jnp.float32) * 0.02,
            'wo': jax.random.normal(ks[3], (D, D), jnp.float32) * 0.02,
            'bq': jnp.zeros((D,), jnp.float32),
            'bk': jnp.zeros((D,), jnp.float32),
            'bv': jnp.zeros((D,), jnp.float32),
            'bo': jnp.zeros((D,), jnp.float32),
            'g1': jnp.ones((D,), jnp.float32),
            'be1': jnp.zeros((D,), jnp.float32),
            'w1': jax.random.normal(ks[4], (D, F), jnp.float32) * 0.02,
            'b1': jnp.zeros((F,), jnp.float32),
            'w2': jax.random.normal(ks[5], (F, D), jnp.float32) * 0.02,
            'b2': jnp.zeros((D,), jnp.float32),
            'g2': jnp.ones((D,), jnp.float32),
            'be2': jnp.zeros((D,), jnp.float32),
        }
        params['layers'].append(lp)
    return params


# ------------------------------------ main -------------------------------------

if __name__ == "__main__":
    vocab, emb_dim, ff_dim = 50, 32, 64
    n_layers, n_heads = 2, 4
    B, S = 2, 8                                     # context_len = 8

    key = jax.random.PRNGKey(0)
    k_par, k_tok = jax.random.split(key)
    params = init_params(k_par, vocab, emb_dim, ff_dim, n_layers)
    tokens = jax.random.randint(k_tok, (B, S), 0, vocab)

    out = jax.jit(decoder_forward, static_argnums=2)(tokens, params, n_heads)
    jax.block_until_ready(out)
    assert out.shape == (B, S, emb_dim)
    assert bool(jnp.all(jnp.isfinite(out)))
    print("KERNEL_OK")
</pallas_src>

<mosaic_0001>
module attributes {stable_mosaic.version = 11 : i64} {
  func.func @_decoder_kernel(%arg0: i32, %arg1: memref<2x8x32xf32, #tpu.memory_space<vmem>>, %arg2: memref<8x16xf32, #tpu.memory_space<vmem>>, %arg3: memref<8x16xf32, #tpu.memory_space<vmem>>, %arg4: memref<1x4x32x8xbf16, #tpu.memory_space<vmem>>, %arg5: memref<1x4x32x8xbf16, #tpu.memory_space<vmem>>, %arg6: memref<1x4x32x8xbf16, #tpu.memory_space<vmem>>, %arg7: memref<1x4x8x32xbf16, #tpu.memory_space<vmem>>, %arg8: memref<1x32x64xbf16, #tpu.memory_space<vmem>>, %arg9: memref<1x64x32xbf16, #tpu.memory_space<vmem>>, %arg10: memref<1x10x64xf32, #tpu.memory_space<vmem>>, %arg11: memref<2x8x32xf32, #tpu.memory_space<vmem>>, %arg12: memref<16x32xf32, #tpu.memory_space<vmem>>, %arg13: memref<8x8xf32, #tpu.memory_space<vmem>>) attributes {dimension_semantics = [#tpu.dimension_semantics<arbitrary>], iteration_bounds = array<i64: 2>, scalar_prefetch = 0 : i64, scratch_operands = 2 : i64, tpu.core_type = #tpu.core_type<tc>, window_params = [{pipeline_mode = #tpu.pipeline_mode<synchronous>, transform_indices = @transform_0, window_bounds = array<i64: 2, 8, 32>}, {pipeline_mode = #tpu.pipeline_mode<synchronous>, transform_indices = @transform_1, window_bounds = array<i64: 8, 16>}, {pipeline_mode = #tpu.pipeline_mode<synchronous>, transform_indices = @transform_2, window_bounds = array<i64: 8, 16>}, {transform_indices = @transform_3, window_bounds = array<i64: 1, 4, 32, 8>}, {transform_indices = @transform_4, window_bounds = array<i64: 1, 4, 32, 8>}, {transform_indices = @transform_5, window_bounds = array<i64: 1, 4, 32, 8>}, {transform_indices = @transform_6, window_bounds = array<i64: 1, 4, 8, 32>}, {transform_indices = @transform_7, window_bounds = array<i64: 1, 32, 64>}, {transform_indices = @transform_8, window_bounds = array<i64: 1, 64, 32>}, {transform_indices = @transform_9, window_bounds = array<i64: 1, 10, 64>}, {pipeline_mode = #tpu.pipeline_mode<synchronous>, transform_indices = @transform_10, window_bounds = array<i64: 2, 8, 32>}]} {
    %c0_i32 = arith.constant 0 : i32
    %0 = arith.cmpi eq, %arg0, %c0_i32 : i32
    %1 = arith.extui %0 : i1 to i32
    %c0_i32_0 = arith.constant 0 : i32
    %2 = arith.cmpi ne, %1, %c0_i32_0 : i32
    scf.if %2 {
      %c0_163 = arith.constant 0 : index
      %c0_164 = arith.constant 0 : index
      %c0_165 = arith.constant 0 : index
      %356 = vector.load %arg1[%c0_163, %c0_164, %c0_165] : memref<2x8x32xf32, #tpu.memory_space<vmem>>, vector<2x8x32xf32>
      %cst_166 = arith.constant 5.65685415 : f32
      %357 = vector.broadcast %cst_166 : f32 to vector<2x8x32xf32>
      %358 = arith.mulf %356, %357 : vector<2x8x32xf32>
      %359 = vector.extract_strided_slice %358 {offsets = [0, 0, 0], sizes = [2, 8, 16], strides = [1, 1, 1]} : vector<2x8x32xf32> to vector<2x8x16xf32>
      %360 = vector.extract_strided_slice %358 {offsets = [0, 0, 16], sizes = [2, 8, 16], strides = [1, 1, 1]} : vector<2x8x32xf32> to vector<2x8x16xf32>
      %c0_167 = arith.constant 0 : index
      %c0_168 = arith.constant 0 : index
      %361 = vector.load %arg2[%c0_167, %c0_168] : memref<8x16xf32, #tpu.memory_space<vmem>>, vector<8x16xf32>
      %c0_169 = arith.constant 0 : index
      %c0_170 = arith.constant 0 : index
      %362 = vector.load %arg3[%c0_169, %c0_170] : memref<8x16xf32, #tpu.memory_space<vmem>>, vector<8x16xf32>
      %363 = vector.shape_cast %361 : vector<8x16xf32> to vector<1x8x16xf32>
      %364 = vector.broadcast %363 : vector<1x8x16xf32> to vector<2x8x16xf32>
      %365 = arith.mulf %359, %364 : vector<2x8x16xf32>
      %366 = vector.shape_cast %362 : vector<8x16xf32> to vector<1x8x16xf32>
      %367 = vector.broadcast %366 : vector<1x8x16xf32> to vector<2x8x16xf32>
      %368 = arith.mulf %360, %367 : vector<2x8x16xf32>
      %369 = arith.subf %365, %368 : vector<2x8x16xf32>
      %370 = vector.shape_cast %361 : vector<8x16xf32> to vector<1x8x16xf32>
      %371 = vector.broadcast %370 : vector<1x8x16xf32> to vector<2x8x16xf32>
      %372 = arith.mulf %360, %371 : vector<2x8x16xf32>
      %373 = vector.shape_cast %362 : vector<8x16xf32> to vector<1x8x16xf32>
      %374 = vector.broadcast %373 : vector<1x8x16xf32> to vector<2x8x16xf32>
      %375 = arith.mulf %359, %374 : vector<2x8x16xf32>
      %376 = arith.addf %372, %375 : vector<2x8x16xf32>
      %377 = tpu.concatenate %369, %376 in 2 : vector<2x8x16xf32>, vector<2x8x16xf32> -> vector<2x8x32xf32>
      %378 = vector.shape_cast %377 : vector<2x8x32xf32> to vector<16x32xf32>
      %c0_171 = arith.constant 0 : index
      %c0_172 = arith.constant 0 : index
      %379 = vector.load %arg12[%c0_171, %c0_172] : memref<16x32xf32, #tpu.memory_space<vmem>>, vector<16x32xf32>
      tpu.vector_store %arg12[%c0_171, %c0_172], %378 {strides = array<i32>} : memref<16x32xf32, #tpu.memory_space<vmem>>, vector<16x32xf32>,
      %380 = tpu.iota {dimensions = array<i32: 0>} : vector<8x8xi32>
      %381 = tpu.iota {dimensions = array<i32: 1>} : vector<8x8xi32>
      %382 = arith.cmpi sge, %380, %381 : vector<8x8xi32>
      %cst_173 = arith.constant 0.000000e+00 : f32
      %cst_174 = arith.constant -1.000000e+09 : f32
      %383 = vector.broadcast %cst_173 : f32 to vector<8x8xf32>
      %384 = vector.broadcast %cst_174 : f32 to vector<8x8xf32>
      %385 = arith.select %382, %383, %384 : vector<8x8xi1>, vector<8x8xf32>
      %c0_175 = arith.constant 0 : index
      %c0_176 = arith.constant 0 : index
      %386 = vector.load %arg13[%c0_175, %c0_176] : memref<8x8xf32, #tpu.memory_space<vmem>>, vector<8x8xf32>
      tpu.vector_store %arg13[%c0_175, %c0_176], %385 {strides = array<i32>} : memref<8x8xf32, #tpu.memory_space<vmem>>, vector<8x8xf32>,
    } else {
    }
    %c0 = arith.constant 0 : index
    %c0_1 = arith.constant 0 : index
    %3 = vector.load %arg12[%c0, %c0_1] : memref<16x32xf32, #tpu.memory_space<vmem>>, vector<16x32xf32>
    %4 = arith.truncf %3 : vector<16x32xf32> to vector<16x32xbf16>
    %c0_2 = arith.constant 0 : index
    %c0_3 = arith.constant 0 : index
    %c0_4 = arith.constant 0 : index
    %5 = vector.load %arg10[%c0_2, %c0_3, %c0_4] : memref<1x10x64xf32, #tpu.memory_space<vmem>>, vector<1x10x64xf32>
    %6 = vector.shape_cast %5 : vector<1x10x64xf32> to vector<10x64xf32>
    %c0_5 = arith.constant 0 : index
    %c0_6 = arith.constant 0 : index
    %7 = vector.load %arg13[%c0_5, %c0_6] : memref<8x8xf32, #tpu.memory_space<vmem>>, vector<8x8xf32>
    %cst = arith.constant 0.000000e+00 : f32
    %8 = vector.broadcast %cst : f32 to vector<8x32xf32>
    %cst_7 = arith.constant 0.000000e+00 : f32
    %9 = vector.broadcast %cst_7 : f32 to vector<8x32xf32>
    %c0_8 = arith.constant 0 : index
    %c0_9 = arith.constant 0 : index
    %c0_10 = arith.constant 0 : index
    %c0_11 = arith.constant 0 : index
    %10 = vector.load %arg4[%c0_8, %c0_9, %c0_10, %c0_11] : memref<1x4x32x8xbf16, #tpu.memory_space<vmem>>, vector<1x1x32x8xbf16>
    %11 = vector.shape_cast %10 : vector<1x1x32x8xbf16> to vector<32x8xbf16>
    %cst_12 = arith.constant dense<0.000000e+00> : vector<16x8xf32>
    %12 = tpu.matmul %4, %11, %cst_12 {dimension_numbers = #tpu.dot_dimension_numbers<[1], [0], [0], [1], [0, 0, 1, 1], [], []>} : vector<16x32xbf16>, vector<32x8xbf16>, vector<16x8xf32> -> vector<16x8xf32>
    %13 = vector.extract_strided_slice %6 {offsets = [0, 0], sizes = [1, 8], strides = [1, 1]} : vector<10x64xf32> to vector<1x8xf32>
    %14 = vector.broadcast %13 : vector<1x8xf32> to vector<16x8xf32>
    %15 = arith.addf %12, %14 : vector<16x8xf32>
    %cst_13 = arith.constant 0.353553385 : f32
    %16 = vector.broadcast %cst_13 : f32 to vector<16x8xf32>
    %17 = arith.mulf %15, %16 : vector<16x8xf32>
    %c0_14 = arith.constant 0 : index
    %c0_15 = arith.constant 0 : index
    %c0_16 = arith.constant 0 : index
    %c0_17 = arith.constant 0 : index
    %18 = vector.load %arg5[%c0_14, %c0_15, %c0_16, %c0_17] : memref<1x4x32x8xbf16, #tpu.memory_space<vmem>>, vector<1x1x32x8xbf16>
    %19 = vector.shape_cast %18 : vector<1x1x32x8xbf16> to vector<32x8xbf16>
    %cst_18 = arith.constant dense<0.000000e+00> : vector<16x8xf32>
    %20 = tpu.matmul %4, %19, %cst_18 {dimension_numbers = #tpu.dot_dimension_numbers<[1], [0], [0], [1], [0, 0, 1, 1], [], []>} : vector<16x32xbf16>, vector<32x8xbf16>, vector<16x8xf32> -> vector<16x8xf32>
    %21 = vector.extract_strided_slice %6 {offsets = [1, 0], sizes = [1, 8], strides = [1, 1]} : vector<10x64xf32> to vector<1x8xf32>
    %22 = vector.broadcast %21 : vector<1x8xf32> to vector<16x8xf32>
    %23 = arith.addf %20, %22 : vector<16x8xf32>
    %c0_19 = arith.constant 0 : index
    %c0_20 = arith.constant 0 : index
    %c0_21 = arith.constant 0 : index
    %c0_22 = arith.constant 0 : index
    %24 = vector.load %arg6[%c0_19, %c0_20, %c0_21, %c0_22] : memref<1x4x32x8xbf16, #tpu.memory_space<vmem>>, vector<1x1x32x8xbf16>
    %25 = vector.shape_cast %24 : vector<1x1x32x8xbf16> to vector<32x8xbf16>
    %cst_23 = arith.constant dense<0.000000e+00> : vector<16x8xf32>
    %26 = tpu.matmul %4, %25, %cst_23 {dimension_numbers = #tpu.dot_dimension_numbers<[1], [0], [0], [1], [0, 0, 1, 1], [], []>} : vector<16x32xbf16>, vector<32x8xbf16>, vector<16x8xf32> -> vector<16x8xf32>
    %27 = vector.extract_strided_slice %6 {offsets = [2, 0], sizes = [1, 8], strides = [1, 1]} : vector<10x64xf32> to vector<1x8xf32>
    %28 = vector.broadcast %27 : vector<1x8xf32> to vector<16x8xf32>
    %29 = arith.addf %26, %28 : vector<16x8xf32>
    %30 = vector.extract_strided_slice %17 {offsets = [0, 0], sizes = [8, 8], strides = [1, 1]} : vector<16x8xf32> to vector<8x8xf32>
    %31 = arith.truncf %30 : vector<8x8xf32> to vector<8x8xbf16>
    %32 = vector.extract_strided_slice %23 {offsets = [0, 0], sizes = [8, 8], strides = [1, 1]} : vector<16x8xf32> to vector<8x8xf32>
    %33 = arith.truncf %32 : vector<8x8xf32> to vector<8x8xbf16>
    %34 = vector.extract_strided_slice %29 {offsets = [0, 0], sizes = [8, 8], strides = [1, 1]} : vector<16x8xf32> to vector<8x8xf32>
    %35 = arith.truncf %34 : vector<8x8xf32> to vector<8x8xbf16>
    %cst_24 = arith.constant dense<0.000000e+00> : vector<8x8xf32>
    %36 = tpu.matmul %31, %33, %cst_24 {dimension_numbers = #tpu.dot_dimension_numbers<[1], [1], [0], [0], [0, 0, 1, 0], [], []>} : vector<8x8xbf16>, vector<8x8xbf16>, vector<8x8xf32> -> vector<8x8xf32>
    %37 = arith.addf %36, %7 : vector<8x8xf32>
    %cst_25 = arith.constant dense<0xFF800000> : vector<8xf32>
    %38 = vector.multi_reduction <maximumf>, %37, %cst_25 [1] : vector<8x8xf32> to vector<8xf32>
    %39 = vector.shape_cast %38 : vector<8xf32> to vector<8x1xf32>
    %40 = vector.broadcast %39 : vector<8x1xf32> to vector<8x8xf32>
    %41 = arith.subf %37, %40 : vector<8x8xf32>
    %42 = math.exp %41 : vector<8x8xf32>
    %cst_26 = arith.constant dense<0.000000e+00> : vector<8xf32>
    %43 = vector.multi_reduction <add>, %42, %cst_26 [1] : vector<8x8xf32> to vector<8xf32>
    %44 = vector.shape_cast %43 : vector<8xf32> to vector<8x1xf32>
    %45 = vector.broadcast %44 : vector<8x1xf32> to vector<8x8xf32>
    %46 = arith.divf %42, %45 : vector<8x8xf32>
    %47 = arith.truncf %46 : vector<8x8xf32> to vector<8x8xbf16>
    %cst_27 = arith.constant dense<0.000000e+00> : vector<8x8xf32>
    %48 = tpu.matmul %47, %35, %cst_27 {dimension_numbers = #tpu.dot_dimension_numbers<[1], [0], [0], [1], [0, 0, 1, 1], [], []>} : vector<8x8xbf16>, vector<8x8xbf16>, vector<8x8xf32> -> vector<8x8xf32>
    %49 = arith.truncf %48 : vector<8x8xf32> to vector<8x8xbf16>
    %c0_28 = arith.constant 0 : index
    %c0_29 = arith.constant 0 : index
    %c0_30 = arith.constant 0 : index
    %c0_31 = arith.constant 0 : index
    %50 = vector.load %arg7[%c0_28, %c0_29, %c0_30, %c0_31] : memref<1x4x8x32xbf16, #tpu.memory_space<vmem>>, vector<1x1x8x32xbf16>
    %51 = vector.shape_cast %50 : vector<1x1x8x32xbf16> to vector<8x32xbf16>
    %cst_32 = arith.constant dense<0.000000e+00> : vector<8x32xf32>
    %52 = tpu.matmul %49, %51, %cst_32 {dimension_numbers = #tpu.dot_dimension_numbers<[1], [0], [0], [1], [0, 0, 1, 1], [], []>} : vector<8x8xbf16>, vector<8x32xbf16>, vector<8x32xf32> -> vector<8x32xf32>
    %53 = arith.addf %8, %52 : vector<8x32xf32>
    %54 = vector.extract_strided_slice %17 {offsets = [8, 0], sizes = [8, 8], strides = [1, 1]} : vector<16x8xf32> to vector<8x8xf32>
    %55 = arith.truncf %54 : vector<8x8xf32> to vector<8x8xbf16>
    %56 = vector.extract_strided_slice %23 {offsets = [8, 0], sizes = [8, 8], strides = [1, 1]} : vector<16x8xf32> to vector<8x8xf32>
    %57 = arith.truncf %56 : vector<8x8xf32> to vector<8x8xbf16>
    %58 = vector.extract_strided_slice %29 {offsets = [8, 0], sizes = [8, 8], strides = [1, 1]} : vector<16x8xf32> to vector<8x8xf32>
    %59 = arith.truncf %58 : vector<8x8xf32> to vector<8x8xbf16>
    %cst_33 = arith.constant dense<0.000000e+00> : vector<8x8xf32>
    %60 = tpu.matmul %55, %57, %cst_33 {dimension_numbers = #tpu.dot_dimension_numbers<[1], [1], [0], [0], [0, 0, 1, 0], [], []>} : vector<8x8xbf16>, vector<8x8xbf16>, vector<8x8xf32> -> vector<8x8xf32>
    %61 = arith.addf %60, %7 : vector<8x8xf32>
    %cst_34 = arith.constant dense<0xFF800000> : vector<8xf32>
    %62 = vector.multi_reduction <maximumf>, %61, %cst_34 [1] : vector<8x8xf32> to vector<8xf32>
    %63 = vector.shape_cast %62 : vector<8xf32> to vector<8x1xf32>
    %64 = vector.broadcast %63 : vector<8x1xf32> to vector<8x8xf32>
    %65 = arith.subf %61, %64 : vector<8x8xf32>
    %66 = math.exp %65 : vector<8x8xf32>
    %cst_35 = arith.constant dense<0.000000e+00> : vector<8xf32>
    %67 = vector.multi_reduction <add>, %66, %cst_35 [1] : vector<8x8xf32> to vector<8xf32>
    %68 = vector.shape_cast %67 : vector<8xf32> to vector<8x1xf32>
    %69 = vector.broadcast %68 : vector<8x1xf32> to vector<8x8xf32>
    %70 = arith.divf %66, %69 : vector<8x8xf32>
    %71 = arith.truncf %70 : vector<8x8xf32> to vector<8x8xbf16>
    %cst_36 = arith.constant dense<0.000000e+00> : vector<8x8xf32>
    %72 = tpu.matmul %71, %59, %cst_36 {dimension_numbers = #tpu.dot_dimension_numbers<[1], [0], [0], [1], [0, 0, 1, 1], [], []>} : vector<8x8xbf16>, vector<8x8xbf16>, vector<8x8xf32> -> vector<8x8xf32>
    %73 = arith.truncf %72 : vector<8x8xf32> to vector<8x8xbf16>
    %c0_37 = arith.constant 0 : index
    %c0_38 = arith.constant 0 : index
    %c0_39 = arith.constant 0 : index
    %c0_40 = arith.constant 0 : index
    %74 = vector.load %arg7[%c0_37, %c0_38, %c0_39, %c0_40] : memref<1x4x8x32xbf16, #tpu.memory_space<vmem>>, vector<1x1x8x32xbf16>
    %75 = vector.shape_cast %74 : vector<1x1x8x32xbf16> to vector<8x32xbf16>
    %cst_41 = arith.constant dense<0.000000e+00> : vector<8x32xf32>
    %76 = tpu.matmul %73, %75, %cst_41 {dimension_numbers = #tpu.dot_dimension_numbers<[1], [0], [0], [1], [0, 0, 1, 1], [], []>} : vector<8x8xbf16>, vector<8x32xbf16>, vector<8x32xf32> -> vector<8x32xf32>
    %77 = arith.addf %9, %76 : vector<8x32xf32>
    %c0_42 = arith.constant 0 : index
    %c1 = arith.constant 1 : index
    %c0_43 = arith.constant 0 : index
    %c0_44 = arith.constant 0 : index
    %78 = vector.load %arg4[%c0_42, %c1, %c0_43, %c0_44] : memref<1x4x32x8xbf16, #tpu.memory_space<vmem>>, vector<1x1x32x8xbf16>
    %79 = vector.shape_cast %78 : vector<1x1x32x8xbf16> to vector<32x8xbf16>
    %cst_45 = arith.constant dense<0.000000e+00> : vector<16x8xf32>
    %80 = tpu.matmul %4, %79, %cst_45 {dimension_numbers = #tpu.dot_dimension_numbers<[1], [0], [0], [1], [0, 0, 1, 1], [], []>} : vector<16x32xbf16>, vector<32x8xbf16>, vector<16x8xf32> -> vector<16x8xf32>
    %81 = vector.extract_strided_slice %6 {offsets = [0, 8], sizes = [1, 8], strides = [1, 1]} : vector<10x64xf32> to vector<1x8xf32>
    %82 = vector.broadcast %81 : vector<1x8xf32> to vector<16x8xf32>
    %83 = arith.addf %80, %82 : vector<16x8xf32>
    %cst_46 = arith.constant 0.353553385 : f32
    %84 = vector.broadcast %cst_46 : f32 to vector<16x8xf32>
    %85 = arith.mulf %83, %84 : vector<16x8xf32>
    %c0_47 = arith.constant 0 : index
    %c1_48 = arith.constant 1 : index
    %c0_49 = arith.constant 0 : index
    %c0_50 = arith.constant 0 : index
    %86 = vector.load %arg5[%c0_47, %c1_48, %c0_49, %c0_50] : memref<1x4x32x8xbf16, #tpu.memory_space<vmem>>, vector<1x1x32x8xbf16>
    %87 = vector.shape_cast %86 : vector<1x1x32x8xbf16> to vector<32x8xbf16>
    %cst_51 = arith.constant dense<0.000000e+00> : vector<16x8xf32>
    %88 = tpu.matmul %4, %87, %cst_51 {dimension_numbers = #tpu.dot_dimension_numbers<[1], [0], [0], [1], [0, 0, 1, 1], [], []>} : vector<16x32xbf16>, vector<32x8xbf16>, vector<16x8xf32> -> vector<16x8xf32>
    %89 = vector.extract_strided_slice %6 {offsets = [1, 8], sizes = [1, 8], strides = [1, 1]} : vector<10x64xf32> to vector<1x8xf32>
    %90 = vector.broadcast %89 : vector<1x8xf32> to vector<16x8xf32>
    %91 = arith.addf %88, %90 : vector<16x8xf32>
    %c0_52 = arith.constant 0 : index
    %c1_53 = arith.constant 1 : index
    %c0_54 = arith.constant 0 : index
    %c0_55 = arith.constant 0 : index
    %92 = vector.load %arg6[%c0_52, %c1_53, %c0_54, %c0_55] : memref<1x4x32x8xbf16, #tpu.memory_space<vmem>>, vector<1x1x32x8xbf16>
    %93 = vector.shape_cast %92 : vector<1x1x32x8xbf16> to vector<32x8xbf16>
    %cst_56 = arith.constant dense<0.000000e+00> : vector<16x8xf32>
    %94 = tpu.matmul %4, %93, %cst_56 {dimension_numbers = #tpu.dot_dimension_numbers<[1], [0], [0], [1], [0, 0, 1, 1], [], []>} : vector<16x32xbf16>, vector<32x8xbf16>, vector<16x8xf32> -> vector<16x8xf32>
    %95 = vector.extract_strided_slice %6 {offsets = [2, 8], sizes = [1, 8], strides = [1, 1]} : vector<10x64xf32> to vector<1x8xf32>
    %96 = vector.broadcast %95 : vector<1x8xf32> to vector<16x8xf32>
    %97 = arith.addf %94, %96 : vector<16x8xf32>
    %98 = vector.extract_strided_slice %85 {offsets = [0, 0], sizes = [8, 8], strides = [1, 1]} : vector<16x8xf32> to vector<8x8xf32>
    %99 = arith.truncf %98 : vector<8x8xf32> to vector<8x8xbf16>
    %100 = vector.extract_strided_slice %91 {offsets = [0, 0], sizes = [8, 8], strides = [1, 1]} : vector<16x8xf32> to vector<8x8xf32>
    %101 = arith.truncf %100 : vector<8x8xf32> to vector<8x8xbf16>
    %102 = vector.extract_strided_slice %97 {offsets = [0, 0], sizes = [8, 8], strides = [1, 1]} : vector<16x8xf32> to vector<8x8xf32>
    %103 = arith.truncf %102 : vector<8x8xf32> to vector<8x8xbf16>
    %cst_57 = arith.constant dense<0.000000e+00> : vector<8x8xf32>
    %104 = tpu.matmul %99, %101, %cst_57 {dimension_numbers = #tpu.dot_dimension_numbers<[1], [1], [0], [0], [0, 0, 1, 0], [], []>} : vector<8x8xbf16>, vector<8x8xbf16>, vector<8x8xf32> -> vector<8x8xf32>
    %105 = arith.addf %104, %7 : vector<8x8xf32>
    %cst_58 = arith.constant dense<0xFF800000> : vector<8xf32>
    %106 = vector.multi_reduction <maximumf>, %105, %cst_58 [1] : vector<8x8xf32> to vector<8xf32>
    %107 = vector.shape_cast %106 : vector<8xf32> to vector<8x1xf32>
    %108 = vector.broadcast %107 : vector<8x1xf32> to vector<8x8xf32>
    %109 = arith.subf %105, %108 : vector<8x8xf32>
    %110 = math.exp %109 : vector<8x8xf32>
    %cst_59 = arith.constant dense<0.000000e+00> : vector<8xf32>
    %111 = vector.multi_reduction <add>, %110, %cst_59 [1] : vector<8x8xf32> to vector<8xf32>
    %112 = vector.shape_cast %111 : vector<8xf32> to vector<8x1xf32>
    %113 = vector.broadcast %112 : vector<8x1xf32> to vector<8x8xf32>
    %114 = arith.divf %110, %113 : vector<8x8xf32>
    %115 = arith.truncf %114 : vector<8x8xf32> to vector<8x8xbf16>
    %cst_60 = arith.constant dense<0.000000e+00> : vector<8x8xf32>
    %116 = tpu.matmul %115, %103, %cst_60 {dimension_numbers = #tpu.dot_dimension_numbers<[1], [0], [0], [1], [0, 0, 1, 1], [], []>} : vector<8x8xbf16>, vector<8x8xbf16>, vector<8x8xf32> -> vector<8x8xf32>
    %117 = arith.truncf %116 : vector<8x8xf32> to vector<8x8xbf16>
    %c0_61 = arith.constant 0 : index
    %c1_62 = arith.constant 1 : index
    %c0_63 = arith.constant 0 : index
    %c0_64 = arith.constant 0 : index
    %118 = vector.load %arg7[%c0_61, %c1_62, %c0_63, %c0_64] : memref<1x4x8x32xbf16, #tpu.memory_space<vmem>>, vector<1x1x8x32xbf16>
    %119 = vector.shape_cast %118 : vector<1x1x8x32xbf16> to vector<8x32xbf16>
    %cst_65 = arith.constant dense<0.000000e+00> : vector<8x32xf32>
    %120 = tpu.matmul %117, %119, %cst_65 {dimension_numbers = #tpu.dot_dimension_numbers<[1], [0], [0], [1], [0, 0, 1, 1], [], []>} : vector<8x8xbf16>, vector<8x32xbf16>, vector<8x32xf32> -> vector<8x32xf32>
    %121 = arith.addf %53, %120 : vector<8x32xf32>
    %122 = vector.extract_strided_slice %85 {offsets = [8, 0], sizes = [8, 8], strides = [1, 1]} : vector<16x8xf32> to vector<8x8xf32>
    %123 = arith.truncf %122 : vector<8x8xf32> to vector<8x8xbf16>
    %124 = vector.extract_strided_slice %91 {offsets = [8, 0], sizes = [8, 8], strides = [1, 1]} : vector<16x8xf32> to vector<8x8xf32>
    %125 = arith.truncf %124 : vector<8x8xf32> to vector<8x8xbf16>
    %126 = vector.extract_strided_slice %97 {offsets = [8, 0], sizes = [8, 8], strides = [1, 1]} : vector<16x8xf32> to vector<8x8xf32>
    %127 = arith.truncf %126 : vector<8x8xf32> to vector<8x8xbf16>
    %cst_66 = arith.constant dense<0.000000e+00> : vector<8x8xf32>
    %128 = tpu.matmul %123, %125, %cst_66 {dimension_numbers = #tpu.dot_dimension_numbers<[1], [1], [0], [0], [0, 0, 1, 0], [], []>} : vector<8x8xbf16>, vector<8x8xbf16>, vector<8x8xf32> -> vector<8x8xf32>
    %129 = arith.addf %128, %7 : vector<8x8xf32>
    %cst_67 = arith.constant dense<0xFF800000> : vector<8xf32>
    %130 = vector.multi_reduction <maximumf>, %129, %cst_67 [1] : vector<8x8xf32> to vector<8xf32>
    %131 = vector.shape_cast %130 : vector<8xf32> to vector<8x1xf32>
    %132 = vector.broadcast %131 : vector<8x1xf32> to vector<8x8xf32>
    %133 = arith.subf %129, %132 : vector<8x8xf32>
    %134 = math.exp %133 : vector<8x8xf32>
    %cst_68 = arith.constant dense<0.000000e+00> : vector<8xf32>
    %135 = vector.multi_reduction <add>, %134, %cst_68 [1] : vector<8x8xf32> to vector<8xf32>
    %136 = vector.shape_cast %135 : vector<8xf32> to vector<8x1xf32>
    %137 = vector.broadcast %136 : vector<8x1xf32> to vector<8x8xf32>
    %138 = arith.divf %134, %137 : vector<8x8xf32>
    %139 = arith.truncf %138 : vector<8x8xf32> to vector<8x8xbf16>
    %cst_69 = arith.constant dense<0.000000e+00> : vector<8x8xf32>
    %140 = tpu.matmul %139, %127, %cst_69 {dimension_numbers = #tpu.dot_dimension_numbers<[1], [0], [0], [1], [0, 0, 1, 1], [], []>} : vector<8x8xbf16>, vector<8x8xbf16>, vector<8x8xf32> -> vector<8x8xf32>
    %141 = arith.truncf %140 : vector<8x8xf32> to vector<8x8xbf16>
    %c0_70 = arith.constant 0 : index
    %c1_71 = arith.constant 1 : index
    %c0_72 = arith.constant 0 : index
    %c0_73 = arith.constant 0 : index
    %142 = vector.load %arg7[%c0_70, %c1_71, %c0_72, %c0_73] : memref<1x4x8x32xbf16, #tpu.memory_space<vmem>>, vector<1x1x8x32xbf16>
    %143 = vector.shape_cast %142 : vector<1x1x8x32xbf16> to vector<8x32xbf16>
    %cst_74 = arith.constant dense<0.000000e+00> : vector<8x32xf32>
    %144 = tpu.matmul %141, %143, %cst_74 {dimension_numbers = #tpu.dot_dimension_numbers<[1], [0], [0], [1], [0, 0, 1, 1], [], []>} : vector<8x8xbf16>, vector<8x32xbf16>, vector<8x32xf32> -> vector<8x32xf32>
    %145 = arith.addf %77, %144 : vector<8x32xf32>
    %c0_75 = arith.constant 0 : index
    %c2 = arith.constant 2 : index
    %c0_76 = arith.constant 0 : index
    %c0_77 = arith.constant 0 : index
    %146 = vector.load %arg4[%c0_75, %c2, %c0_76, %c0_77] : memref<1x4x32x8xbf16, #tpu.memory_space<vmem>>, vector<1x1x32x8xbf16>
    %147 = vector.shape_cast %146 : vector<1x1x32x8xbf16> to vector<32x8xbf16>
    %cst_78 = arith.constant dense<0.000000e+00> : vector<16x8xf32>
    %148 = tpu.matmul %4, %147, %cst_78 {dimension_numbers = #tpu.dot_dimension_numbers<[1], [0], [0], [1], [0, 0, 1, 1], [], []>} : vector<16x32xbf16>, vector<32x8xbf16>, vector<16x8xf32> -> vector<16x8xf32>
    %149 = vector.extract_strided_slice %6 {offsets = [0, 16], sizes = [1, 8], strides = [1, 1]} : vector<10x64xf32> to vector<1x8xf32>
    %150 = vector.broadcast %149 : vector<1x8xf32> to vector<16x8xf32>
    %151 = arith.addf %148, %150 : vector<16x8xf32>
    %cst_79 = arith.constant 0.353553385 : f32
    %152 = vector.broadcast %cst_79 : f32 to vector<16x8xf32>
    %153 = arith.mulf %151, %152 : vector<16x8xf32>
    %c0_80 = arith.constant 0 : index
    %c2_81 = arith.constant 2 : index
    %c0_82 = arith.constant 0 : index
    %c0_83 = arith.constant 0 : index
    %154 = vector.load %arg5[%c0_80, %c2_81, %c0_82, %c0_83] : memref<1x4x32x8xbf16, #tpu.memory_space<vmem>>, vector<1x1x32x8xbf16>
    %155 = vector.shape_cast %154 : vector<1x1x32x8xbf16> to vector<32x8xbf16>
    %cst_84 = arith.constant dense<0.000000e+00> : vector<16x8xf32>
    %156 = tpu.matmul %4, %155, %cst_84 {dimension_numbers = #tpu.dot_dimension_numbers<[1], [0], [0], [1], [0, 0, 1, 1], [], []>} : vector<16x32xbf16>, vector<32x8xbf16>, vector<16x8xf32> -> vector<16x8xf32>
    %157 = vector.extract_strided_slice %6 {offsets = [1, 16], sizes = [1, 8], strides = [1, 1]} : vector<10x64xf32> to vector<1x8xf32>
    %158 = vector.broadcast %157 : vector<1x8xf32> to vector<16x8xf32>
    %159 = arith.addf %156, %158 : vector<16x8xf32>
    %c0_85 = arith.constant 0 : index
    %c2_86 = arith.constant 2 : index
    %c0_87 = arith.constant 0 : index
    %c0_88 = arith.constant 0 : index
    %160 = vector.load %arg6[%c0_85, %c2_86, %c0_87, %c0_88] : memref<1x4x32x8xbf16, #tpu.memory_space<vmem>>, vector<1x1x32x8xbf16>
    %161 = vector.shape_cast %160 : vector<1x1x32x8xbf16> to vector<32x8xbf16>
    %cst_89 = arith.constant dense<0.000000e+00> : vector<16x8xf32>
    %162 = tpu.matmul %4, %161, %cst_89 {dimension_numbers = #tpu.dot_dimension_numbers<[1], [0], [0], [1], [0, 0, 1, 1], [], []>} : vector<16x32xbf16>, vector<32x8xbf16>, vector<16x8xf32> -> vector<16x8xf32>
    %163 = vector.extract_strided_slice %6 {offsets = [2, 16], sizes = [1, 8], strides = [1, 1]} : vector<10x64xf32> to vector<1x8xf32>
    %164 = vector.broadcast %163 : vector<1x8xf32> to vector<16x8xf32>
    %165 = arith.addf %162, %164 : vector<16x8xf32>
    %166 = vector.extract_strided_slice %153 {offsets = [0, 0], sizes = [8, 8], strides = [1, 1]} : vector<16x8xf32> to vector<8x8xf32>
    %167 = arith.truncf %166 : vector<8x8xf32> to vector<8x8xbf16>
    %168 = vector.extract_strided_slice %159 {offsets = [0, 0], sizes = [8, 8], strides = [1, 1]} : vector<16x8xf32> to vector<8x8xf32>
    %169 = arith.truncf %168 : vector<8x8xf32> to vector<8x8xbf16>
    %170 = vector.extract_strided_slice %165 {offsets = [0, 0], sizes = [8, 8], strides = [1, 1]} : vector<16x8xf32> to vector<8x8xf32>
    %171 = arith.truncf %170 : vector<8x8xf32> to vector<8x8xbf16>
    %cst_90 = arith.constant dense<0.000000e+00> : vector<8x8xf32>
    %172 = tpu.matmul %167, %169, %cst_90 {dimension_numbers = #tpu.dot_dimension_numbers<[1], [1], [0], [0], [0, 0, 1, 0], [], []>} : vector<8x8xbf16>, vector<8x8xbf16>, vector<8x8xf32> -> vector<8x8xf32>
    %173 = arith.addf %172, %7 : vector<8x8xf32>
    %cst_91 = arith.constant dense<0xFF800000> : vector<8xf32>
    %174 = vector.multi_reduction <maximumf>, %173, %cst_91 [1] : vector<8x8xf32> to vector<8xf32>
    %175 = vector.shape_cast %174 : vector<8xf32> to vector<8x1xf32>
    %176 = vector.broadcast %175 : vector<8x1xf32> to vector<8x8xf32>
    %177 = arith.subf %173, %176 : vector<8x8xf32>
    %178 = math.exp %177 : vector<8x8xf32>
    %cst_92 = arith.constant dense<0.000000e+00> : vector<8xf32>
    %179 = vector.multi_reduction <add>, %178, %cst_92 [1] : vector<8x8xf32> to vector<8xf32>
    %180 = vector.shape_cast %179 : vector<8xf32> to vector<8x1xf32>
    %181 = vector.broadcast %180 : vector<8x1xf32> to vector<8x8xf32>
    %182 = arith.divf %178, %181 : vector<8x8xf32>
    %183 = arith.truncf %182 : vector<8x8xf32> to vector<8x8xbf16>
    %cst_93 = arith.constant dense<0.000000e+00> : vector<8x8xf32>
    %184 = tpu.matmul %183, %171, %cst_93 {dimension_numbers = #tpu.dot_dimension_numbers<[1], [0], [0], [1], [0, 0, 1, 1], [], []>} : vector<8x8xbf16>, vector<8x8xbf16>, vector<8x8xf32> -> vector<8x8xf32>
    %185 = arith.truncf %184 : vector<8x8xf32> to vector<8x8xbf16>
    %c0_94 = arith.constant 0 : index
    %c2_95 = arith.constant 2 : index
    %c0_96 = arith.constant 0 : index
    %c0_97 = arith.constant 0 : index
    %186 = vector.load %arg7[%c0_94, %c2_95, %c0_96, %c0_97] : memref<1x4x8x32xbf16, #tpu.memory_space<vmem>>, vector<1x1x8x32xbf16>
    %187 = vector.shape_cast %186 : vector<1x1x8x32xbf16> to vector<8x32xbf16>
    %cst_98 = arith.constant dense<0.000000e+00> : vector<8x32xf32>
    %188 = tpu.matmul %185, %187, %cst_98 {dimension_numbers = #tpu.dot_dimension_numbers<[1], [0], [0], [1], [0, 0, 1, 1], [], []>} : vector<8x8xbf16>, vector<8x32xbf16>, vector<8x32xf32> -> vector<8x32xf32>
    %189 = arith.addf %121, %188 : vector<8x32xf32>
    %190 = vector.extract_strided_slice %153 {offsets = [8, 0], sizes = [8, 8], strides = [1, 1]} : vector<16x8xf32> to vector<8x8xf32>
    %191 = arith.truncf %190 : vector<8x8xf32> to vector<8x8xbf16>
    %192 = vector.extract_strided_slice %159 {offsets = [8, 0], sizes = [8, 8], strides = [1, 1]} : vector<16x8xf32> to vector<8x8xf32>
    %193 = arith.truncf %192 : vector<8x8xf32> to vector<8x8xbf16>
    %194 = vector.extract_strided_slice %165 {offsets = [8, 0], sizes = [8, 8], strides = [1, 1]} : vector<16x8xf32> to vector<8x8xf32>
    %195 = arith.truncf %194 : vector<8x8xf32> to vector<8x8xbf16>
    %cst_99 = arith.constant dense<0.000000e+00> : vector<8x8xf32>
    %196 = tpu.matmul %191, %193, %cst_99 {dimension_numbers = #tpu.dot_dimension_numbers<[1], [1], [0], [0], [0, 0, 1, 0], [], []>} : vector<8x8xbf16>, vector<8x8xbf16>, vector<8x8xf32> -> vector<8x8xf32>
    %197 = arith.addf %196, %7 : vector<8x8xf32>
    %cst_100 = arith.constant dense<0xFF800000> : vector<8xf32>
    %198 = vector.multi_reduction <maximumf>, %197, %cst_100 [1] : vector<8x8xf32> to vector<8xf32>
    %199 = vector.shape_cast %198 : vector<8xf32> to vector<8x1xf32>
    %200 = vector.broadcast %199 : vector<8x1xf32> to vector<8x8xf32>
    %201 = arith.subf %197, %200 : vector<8x8xf32>
    %202 = math.exp %201 : vector<8x8xf32>
    %cst_101 = arith.constant dense<0.000000e+00> : vector<8xf32>
    %203 = vector.multi_reduction <add>, %202, %cst_101 [1] : vector<8x8xf32> to vector<8xf32>
    %204 = vector.shape_cast %203 : vector<8xf32> to vector<8x1xf32>
    %205 = vector.broadcast %204 : vector<8x1xf32> to vector<8x8xf32>
    %206 = arith.divf %202, %205 : vector<8x8xf32>
    %207 = arith.truncf %206 : vector<8x8xf32> to vector<8x8xbf16>
    %cst_102 = arith.constant dense<0.000000e+00> : vector<8x8xf32>
    %208 = tpu.matmul %207, %195, %cst_102 {dimension_numbers = #tpu.dot_dimension_numbers<[1], [0], [0], [1], [0, 0, 1, 1], [], []>} : vector<8x8xbf16>, vector<8x8xbf16>, vector<8x8xf32> -> vector<8x8xf32>
    %209 = arith.truncf %208 : vector<8x8xf32> to vector<8x8xbf16>
    %c0_103 = arith.constant 0 : index
    %c2_104 = arith.constant 2 : index
    %c0_105 = arith.constant 0 : index
    %c0_106 = arith.constant 0 : index
    %210 = vector.load %arg7[%c0_103, %c2_104, %c0_105, %c0_106] : memref<1x4x8x32xbf16, #tpu.memory_space<vmem>>, vector<1x1x8x32xbf16>
    %211 = vector.shape_cast %210 : vector<1x1x8x32xbf16> to vector<8x32xbf16>
    %cst_107 = arith.constant dense<0.000000e+00> : vector<8x32xf32>
    %212 = tpu.matmul %209, %211, %cst_107 {dimension_numbers = #tpu.dot_dimension_numbers<[1], [0], [0], [1], [0, 0, 1, 1], [], []>} : vector<8x8xbf16>, vector<8x32xbf16>, vector<8x32xf32> -> vector<8x32xf32>
    %213 = arith.addf %145, %212 : vector<8x32xf32>
    %c0_108 = arith.constant 0 : index
    %c3 = arith.constant 3 : index
    %c0_109 = arith.constant 0 : index
    %c0_110 = arith.constant 0 : index
    %214 = vector.load %arg4[%c0_108, %c3, %c0_109, %c0_110] : memref<1x4x32x8xbf16, #tpu.memory_space<vmem>>, vector<1x1x32x8xbf16>
    %215 = vector.shape_cast %214 : vector<1x1x32x8xbf16> to vector<32x8xbf16>
    %cst_111 = arith.constant dense<0.000000e+00> : vector<16x8xf32>
    %216 = tpu.matmul %4, %215, %cst_111 {dimension_numbers = #tpu.dot_dimension_numbers<[1], [0], [0], [1], [0, 0, 1, 1], [], []>} : vector<16x32xbf16>, vector<32x8xbf16>, vector<16x8xf32> -> vector<16x8xf32>
    %217 = vector.extract_strided_slice %6 {offsets = [0, 24], sizes = [1, 8], strides = [1, 1]} : vector<10x64xf32> to vector<1x8xf32>
    %218 = vector.broadcast %217 : vector<1x8xf32> to vector<16x8xf32>
    %219 = arith.addf %216, %218 : vector<16x8xf32>
    %cst_112 = arith.constant 0.353553385 : f32
    %220 = vector.broadcast %cst_112 : f32 to vector<16x8xf32>
    %221 = arith.mulf %219, %220 : vector<16x8xf32>
    %c0_113 = arith.constant 0 : index
    %c3_114 = arith.constant 3 : index
    %c0_115 = arith.constant 0 : index
    %c0_116 = arith.constant 0 : index
    %222 = vector.load %arg5[%c0_113, %c3_114, %c0_115, %c0_116] : memref<1x4x32x8xbf16, #tpu.memory_space<vmem>>, vector<1x1x32x8xbf16>
    %223 = vector.shape_cast %222 : vector<1x1x32x8xbf16> to vector<32x8xbf16>
    %cst_117 = arith.constant dense<0.000000e+00> : vector<16x8xf32>
    %224 = tpu.matmul %4, %223, %cst_117 {dimension_numbers = #tpu.dot_dimension_numbers<[1], [0], [0], [1], [0, 0, 1, 1], [], []>} : vector<16x32xbf16>, vector<32x8xbf16>, vector<16x8xf32> -> vector<16x8xf32>
    %225 = vector.extract_strided_slice %6 {offsets = [1, 24], sizes = [1, 8], strides = [1, 1]} : vector<10x64xf32> to vector<1x8xf32>
    %226 = vector.broadcast %225 : vector<1x8xf32> to vector<16x8xf32>
    %227 = arith.addf %224, %226 : vector<16x8xf32>
    %c0_118 = arith.constant 0 : index
    %c3_119 = arith.constant 3 : index
    %c0_120 = arith.constant 0 : index
    %c0_121 = arith.constant 0 : index
    %228 = vector.load %arg6[%c0_118, %c3_119, %c0_120, %c0_121] : memref<1x4x32x8xbf16, #tpu.memory_space<vmem>>, vector<1x1x32x8xbf16>
    %229 = vector.shape_cast %228 : vector<1x1x32x8xbf16> to vector<32x8xbf16>
    %cst_122 = arith.constant dense<0.000000e+00> : vector<16x8xf32>
    %230 = tpu.matmul %4, %229, %cst_122 {dimension_numbers = #tpu.dot_dimension_numbers<[1], [0], [0], [1], [0, 0, 1, 1], [], []>} : vector<16x32xbf16>, vector<32x8xbf16>, vector<16x8xf32> -> vector<16x8xf32>
    %231 = vector.extract_strided_slice %6 {offsets = [2, 24], sizes = [1, 8], strides = [1, 1]} : vector<10x64xf32> to vector<1x8xf32>
    %232 = vector.broadcast %231 : vector<1x8xf32> to vector<16x8xf32>
    %233 = arith.addf %230, %232 : vector<16x8xf32>
    %234 = vector.extract_strided_slice %221 {offsets = [0, 0], sizes = [8, 8], strides = [1, 1]} : vector<16x8xf32> to vector<8x8xf32>
    %235 = arith.truncf %234 : vector<8x8xf32> to vector<8x8xbf16>
    %236 = vector.extract_strided_slice %227 {offsets = [0, 0], sizes = [8, 8], strides = [1, 1]} : vector<16x8xf32> to vector<8x8xf32>
    %237 = arith.truncf %236 : vector<8x8xf32> to vector<8x8xbf16>
    %238 = vector.extract_strided_slice %233 {offsets = [0, 0], sizes = [8, 8], strides = [1, 1]} : vector<16x8xf32> to vector<8x8xf32>
    %239 = arith.truncf %238 : vector<8x8xf32> to vector<8x8xbf16>
    %cst_123 = arith.constant dense<0.000000e+00> : vector<8x8xf32>
    %240 = tpu.matmul %235, %237, %cst_123 {dimension_numbers = #tpu.dot_dimension_numbers<[1], [1], [0], [0], [0, 0, 1, 0], [], []>} : vector<8x8xbf16>, vector<8x8xbf16>, vector<8x8xf32> -> vector<8x8xf32>
    %241 = arith.addf %240, %7 : vector<8x8xf32>
    %cst_124 = arith.constant dense<0xFF800000> : vector<8xf32>
    %242 = vector.multi_reduction <maximumf>, %241, %cst_124 [1] : vector<8x8xf32> to vector<8xf32>
    %243 = vector.shape_cast %242 : vector<8xf32> to vector<8x1xf32>
    %244 = vector.broadcast %243 : vector<8x1xf32> to vector<8x8xf32>
    %245 = arith.subf %241, %244 : vector<8x8xf32>
    %246 = math.exp %245 : vector<8x8xf32>
    %cst_125 = arith.constant dense<0.000000e+00> : vector<8xf32>
    %247 = vector.multi_reduction <add>, %246, %cst_125 [1] : vector<8x8xf32> to vector<8xf32>
    %248 = vector.shape_cast %247 : vector<8xf32> to vector<8x1xf32>
    %249 = vector.broadcast %248 : vector<8x1xf32> to vector<8x8xf32>
    %250 = arith.divf %246, %249 : vector<8x8xf32>
    %251 = arith.truncf %250 : vector<8x8xf32> to vector<8x8xbf16>
    %cst_126 = arith.constant dense<0.000000e+00> : vector<8x8xf32>
    %252 = tpu.matmul %251, %239, %cst_126 {dimension_numbers = #tpu.dot_dimension_numbers<[1], [0], [0], [1], [0, 0, 1, 1], [], []>} : vector<8x8xbf16>, vector<8x8xbf16>, vector<8x8xf32> -> vector<8x8xf32>
    %253 = arith.truncf %252 : vector<8x8xf32> to vector<8x8xbf16>
    %c0_127 = arith.constant 0 : index
    %c3_128 = arith.constant 3 : index
    %c0_129 = arith.constant 0 : index
    %c0_130 = arith.constant 0 : index
    %254 = vector.load %arg7[%c0_127, %c3_128, %c0_129, %c0_130] : memref<1x4x8x32xbf16, #tpu.memory_space<vmem>>, vector<1x1x8x32xbf16>
    %255 = vector.shape_cast %254 : vector<1x1x8x32xbf16> to vector<8x32xbf16>
    %cst_131 = arith.constant dense<0.000000e+00> : vector<8x32xf32>
    %256 = tpu.matmul %253, %255, %cst_131 {dimension_numbers = #tpu.dot_dimension_numbers<[1], [0], [0], [1], [0, 0, 1, 1], [], []>} : vector<8x8xbf16>, vector<8x32xbf16>, vector<8x32xf32> -> vector<8x32xf32>
    %257 = arith.addf %189, %256 : vector<8x32xf32>
    %258 = vector.extract_strided_slice %221 {offsets = [8, 0], sizes = [8, 8], strides = [1, 1]} : vector<16x8xf32> to vector<8x8xf32>
    %259 = arith.truncf %258 : vector<8x8xf32> to vector<8x8xbf16>
    %260 = vector.extract_strided_slice %227 {offsets = [8, 0], sizes = [8, 8], strides = [1, 1]} : vector<16x8xf32> to vector<8x8xf32>
    %261 = arith.truncf %260 : vector<8x8xf32> to vector<8x8xbf16>
    %262 = vector.extract_strided_slice %233 {offsets = [8, 0], sizes = [8, 8], strides = [1, 1]} : vector<16x8xf32> to vector<8x8xf32>
    %263 = arith.truncf %262 : vector<8x8xf32> to vector<8x8xbf16>
    %cst_132 = arith.constant dense<0.000000e+00> : vector<8x8xf32>
    %264 = tpu.matmul %259, %261, %cst_132 {dimension_numbers = #tpu.dot_dimension_numbers<[1], [1], [0], [0], [0, 0, 1, 0], [], []>} : vector<8x8xbf16>, vector<8x8xbf16>, vector<8x8xf32> -> vector<8x8xf32>
    %265 = arith.addf %264, %7 : vector<8x8xf32>
    %cst_133 = arith.constant dense<0xFF800000> : vector<8xf32>
    %266 = vector.multi_reduction <maximumf>, %265, %cst_133 [1] : vector<8x8xf32> to vector<8xf32>
    %267 = vector.shape_cast %266 : vector<8xf32> to vector<8x1xf32>
    %268 = vector.broadcast %267 : vector<8x1xf32> to vector<8x8xf32>
    %269 = arith.subf %265, %268 : vector<8x8xf32>
    %270 = math.exp %269 : vector<8x8xf32>
    %cst_134 = arith.constant dense<0.000000e+00> : vector<8xf32>
    %271 = vector.multi_reduction <add>, %270, %cst_134 [1] : vector<8x8xf32> to vector<8xf32>
    %272 = vector.shape_cast %271 : vector<8xf32> to vector<8x1xf32>
    %273 = vector.broadcast %272 : vector<8x1xf32> to vector<8x8xf32>
    %274 = arith.divf %270, %273 : vector<8x8xf32>
    %275 = arith.truncf %274 : vector<8x8xf32> to vector<8x8xbf16>
    %cst_135 = arith.constant dense<0.000000e+00> : vector<8x8xf32>
    %276 = tpu.matmul %275, %263, %cst_135 {dimension_numbers = #tpu.dot_dimension_numbers<[1], [0], [0], [1], [0, 0, 1, 1], [], []>} : vector<8x8xbf16>, vector<8x8xbf16>, vector<8x8xf32> -> vector<8x8xf32>
    %277 = arith.truncf %276 : vector<8x8xf32> to vector<8x8xbf16>
    %c0_136 = arith.constant 0 : index
    %c3_137 = arith.constant 3 : index
    %c0_138 = arith.constant 0 : index
    %c0_139 = arith.constant 0 : index
    %278 = vector.load %arg7[%c0_136, %c3_137, %c0_138, %c0_139] : memref<1x4x8x32xbf16, #tpu.memory_space<vmem>>, vector<1x1x8x32xbf16>
    %279 = vector.shape_cast %278 : vector<1x1x8x32xbf16> to vector<8x32xbf16>
    %cst_140 = arith.constant dense<0.000000e+00> : vector<8x32xf32>
    %280 = tpu.matmul %277, %279, %cst_140 {dimension_numbers = #tpu.dot_dimension_numbers<[1], [0], [0], [1], [0, 0, 1, 1], [], []>} : vector<8x8xbf16>, vector<8x32xbf16>, vector<8x32xf32> -> vector<8x32xf32>
    %281 = arith.addf %213, %280 : vector<8x32xf32>
    %282 = tpu.concatenate %257, %281 in 0 : vector<8x32xf32>, vector<8x32xf32> -> vector<16x32xf32>
    %283 = vector.extract_strided_slice %6 {offsets = [3, 0], sizes = [1, 32], strides = [1, 1]} : vector<10x64xf32> to vector<1x32xf32>
    %284 = vector.broadcast %283 : vector<1x32xf32> to vector<16x32xf32>
    %285 = arith.addf %282, %284 : vector<16x32xf32>
    %286 = arith.addf %3, %285 : vector<16x32xf32>
    %287 = vector.extract_strided_slice %6 {offsets = [4, 0], sizes = [1, 32], strides = [1, 1]} : vector<10x64xf32> to vector<1x32xf32>
    %288 = vector.extract_strided_slice %6 {offsets = [5, 0], sizes = [1, 32], strides = [1, 1]} : vector<10x64xf32> to vector<1x32xf32>
    %cst_141 = arith.constant dense<0.000000e+00> : vector<16xf32>
    %289 = vector.multi_reduction <add>, %286, %cst_141 [1] : vector<16x32xf32> to vector<16xf32>
    %290 = vector.shape_cast %289 : vector<16xf32> to vector<16x1xf32>
    %cst_142 = arith.constant 3.200000e+01 : f32
    %291 = vector.broadcast %cst_142 : f32 to vector<16x1xf32>
    %292 = arith.divf %290, %291 : vector<16x1xf32>
    %293 = vector.broadcast %292 : vector<16x1xf32> to vector<16x32xf32>
    %294 = arith.subf %286, %293 : vector<16x32xf32>
    %295 = arith.mulf %294, %294 : vector<16x32xf32>
    %cst_143 = arith.constant dense<0.000000e+00> : vector<16xf32>
    %296 = vector.multi_reduction <add>, %295, %cst_143 [1] : vector<16x32xf32> to vector<16xf32>
    %297 = vector.shape_cast %296 : vector<16xf32> to vector<16x1xf32>
    %cst_144 = arith.constant 3.200000e+01 : f32
    %298 = vector.broadcast %cst_144 : f32 to vector<16x1xf32>
    %299 = arith.divf %297, %298 : vector<16x1xf32>
    %300 = vector.broadcast %292 : vector<16x1xf32> to vector<16x32xf32>
    %301 = arith.subf %286, %300 : vector<16x32xf32>
    %cst_145 = arith.constant 9.99999974E-6 : f32
    %302 = vector.broadcast %cst_145 : f32 to vector<16x1xf32>
    %303 = arith.addf %299, %302 : vector<16x1xf32>
    %304 = math.rsqrt %303 : vector<16x1xf32>
    %305 = vector.broadcast %304 : vector<16x1xf32> to vector<16x32xf32>
    %306 = arith.mulf %301, %305 : vector<16x32xf32>
    %307 = vector.broadcast %287 : vector<1x32xf32> to vector<16x32xf32>
    %308 = arith.mulf %306, %307 : vector<16x32xf32>
    %309 = vector.broadcast %288 : vector<1x32xf32> to vector<16x32xf32>
    %310 = arith.addf %308, %309 : vector<16x32xf32>
    %311 = arith.truncf %310 : vector<16x32xf32> to vector<16x32xbf16>
    %c0_146 = arith.constant 0 : index
    %c0_147 = arith.constant 0 : index
    %c0_148 = arith.constant 0 : index
    %312 = vector.load %arg8[%c0_146, %c0_147, %c0_148] : memref<1x32x64xbf16, #tpu.memory_space<vmem>>, vector<1x32x64xbf16>
    %313 = vector.shape_cast %312 : vector<1x32x64xbf16> to vector<32x64xbf16>
    %cst_149 = arith.constant dense<0.000000e+00> : vector<16x64xf32>
    %314 = tpu.matmul %311, %313, %cst_149 {dimension_numbers = #tpu.dot_dimension_numbers<[1], [0], [0], [1], [0, 0, 1, 1], [], []>} : vector<16x32xbf16>, vector<32x64xbf16>, vector<16x64xf32> -> vector<16x64xf32>
    %315 = vector.extract_strided_slice %6 {offsets = [6, 0], sizes = [1, 64], strides = [1, 1]} : vector<10x64xf32> to vector<1x64xf32>
    %316 = vector.broadcast %315 : vector<1x64xf32> to vector<16x64xf32>
    %317 = arith.addf %314, %316 : vector<16x64xf32>
    %cst_150 = arith.constant 0.000000e+00 : f32
    %318 = vector.broadcast %cst_150 : f32 to vector<16x64xf32>
    %319 = arith.maximumf %317, %318 : vector<16x64xf32>
    %320 = arith.truncf %319 : vector<16x64xf32> to vector<16x64xbf16>
    %c0_151 = arith.constant 0 : index
    %c0_152 = arith.constant 0 : index
    %c0_153 = arith.constant 0 : index
    %321 = vector.load %arg9[%c0_151, %c0_152, %c0_153] : memref<1x64x32xbf16, #tpu.memory_space<vmem>>, vector<1x64x32xbf16>
    %322 = vector.shape_cast %321 : vector<1x64x32xbf16> to vector<64x32xbf16>
    %cst_154 = arith.constant dense<0.000000e+00> : vector<16x32xf32>
    %323 = tpu.matmul %320, %322, %cst_154 {dimension_numbers = #tpu.dot_dimension_numbers<[1], [0], [0], [1], [0, 0, 1, 1], [], []>} : vector<16x64xbf16>, vector<64x32xbf16>, vector<16x32xf32> -> vector<16x32xf32>
    %324 = vector.extract_strided_slice %6 {offsets = [7, 0], sizes = [1, 32], strides = [1, 1]} : vector<10x64xf32> to vector<1x32xf32>
    %325 = vector.broadcast %324 : vector<1x32xf32> to vector<16x32xf32>
    %326 = arith.addf %323, %325 : vector<16x32xf32>
    %327 = arith.addf %310, %326 : vector<16x32xf32>
    %328 = vector.extract_strided_slice %6 {offsets = [8, 0], sizes = [1, 32], strides = [1, 1]} : vector<10x64xf32> to vector<1x32xf32>
    %329 = vector.extract_strided_slice %6 {offsets = [9, 0], sizes = [1, 32], strides = [1, 1]} : vector<10x64xf32> to vector<1x32xf32>
    %cst_155 = arith.constant dense<0.000000e+00> : vector<16xf32>
    %330 = vector.multi_reduction <add>, %327, %cst_155 [1] : vector<16x32xf32> to vector<16xf32>
    %331 = vector.shape_cast %330 : vector<16xf32> to vector<16x1xf32>
    %cst_156 = arith.constant 3.200000e+01 : f32
    %332 = vector.broadcast %cst_156 : f32 to vector<16x1xf32>
    %333 = arith.divf %331, %332 : vector<16x1xf32>
    %334 = vector.broadcast %333 : vector<16x1xf32> to vector<16x32xf32>
    %335 = arith.subf %327, %334 : vector<16x32xf32>
    %336 = arith.mulf %335, %335 : vector<16x32xf32>
    %cst_157 = arith.constant dense<0.000000e+00> : vector<16xf32>
    %337 = vector.multi_reduction <add>, %336, %cst_157 [1] : vector<16x32xf32> to vector<16xf32>
    %338 = vector.shape_cast %337 : vector<16xf32> to vector<16x1xf32>
    %cst_158 = arith.constant 3.200000e+01 : f32
    %339 = vector.broadcast %cst_158 : f32 to vector<16x1xf32>
    %340 = arith.divf %338, %339 : vector<16x1xf32>
    %341 = vector.broadcast %333 : vector<16x1xf32> to vector<16x32xf32>
    %342 = arith.subf %327, %341 : vector<16x32xf32>
    %cst_159 = arith.constant 9.99999974E-6 : f32
    %343 = vector.broadcast %cst_159 : f32 to vector<16x1xf32>
    %344 = arith.addf %340, %343 : vector<16x1xf32>
    %345 = math.rsqrt %344 : vector<16x1xf32>
    %346 = vector.broadcast %345 : vector<16x1xf32> to vector<16x32xf32>
    %347 = arith.mulf %342, %346 : vector<16x32xf32>
    %348 = vector.broadcast %328 : vector<1x32xf32> to vector<16x32xf32>
    %349 = arith.mulf %347, %348 : vector<16x32xf32>
    %350 = vector.broadcast %329 : vector<1x32xf32> to vector<16x32xf32>
    %351 = arith.addf %349, %350 : vector<16x32xf32>
    %c0_160 = arith.constant 0 : index
    %c0_161 = arith.constant 0 : index
    %352 = vector.load %arg12[%c0_160, %c0_161] : memref<16x32xf32, #tpu.memory_space<vmem>>, vector<16x32xf32>
    tpu.vector_store %arg12[%c0_160, %c0_161], %351 {strides = array<i32>} : memref<16x32xf32, #tpu.memory_space<vmem>>, vector<16x32xf32>,
    %c1_i32 = arith.constant 1 : i32
    %353 = arith.cmpi eq, %arg0, %c1_i32 : i32
    %354 = arith.extui %353 : i1 to i32
    %c0_i32_162 = arith.constant 0 : i32
    %355 = arith.cmpi ne, %354, %c0_i32_162 : i32
    scf.if %355 {
      %356 = vector.shape_cast %351 : vector<16x32xf32> to vector<2x8x32xf32>
      %c0_163 = arith.constant 0 : index
      %c0_164 = arith.constant 0 : index
      %c0_165 = arith.constant 0 : index
      %357 = vector.load %arg11[%c0_163, %c0_164, %c0_165] : memref<2x8x32xf32, #tpu.memory_space<vmem>>, vector<2x8x32xf32>
      tpu.vector_store %arg11[%c0_163, %c0_164, %c0_165], %356 {strides = array<i32>} : memref<2x8x32xf32, #tpu.memory_space<vmem>>, vector<2x8x32xf32>,
    } else {
    }
    return
  }
  func.func @transform_0(%arg0: i32) -> (i32, i32, i32) {
    %c0_i32 = arith.constant 0 : i32
    %c0_i32_0 = arith.constant 0 : i32
    %c0_i32_1 = arith.constant 0 : i32
    %c0_i32_2 = arith.constant 0 : i32
    return %c0_i32, %c0_i32_0, %c0_i32_1 : i32, i32, i32
  }
  func.func @transform_1(%arg0: i32) -> (i32, i32) {
    %c0_i32 = arith.constant 0 : i32
    %c0_i32_0 = arith.constant 0 : i32
    %c0_i32_1 = arith.constant 0 : i32
    return %c0_i32, %c0_i32_0 : i32, i32
  }
  func.func @transform_2(%arg0: i32) -> (i32, i32) {
    %c0_i32 = arith.constant 0 : i32
    %c0_i32_0 = arith.constant 0 : i32
    %c0_i32_1 = arith.constant 0 : i32
    return %c0_i32, %c0_i32_0 : i32, i32
  }
  func.func @transform_3(%arg0: i32) -> (i32, i32, i32, i32) {
    %c0_i32 = arith.constant 0 : i32
    %c0_i32_0 = arith.constant 0 : i32
    %c0_i32_1 = arith.constant 0 : i32
    %c0_i32_2 = arith.constant 0 : i32
    return %arg0, %c0_i32, %c0_i32_0, %c0_i32_1 : i32, i32, i32, i32
  }
  func.func @transform_4(%arg0: i32) -> (i32, i32, i32, i32) {
    %c0_i32 = arith.constant 0 : i32
    %c0_i32_0 = arith.constant 0 : i32
    %c0_i32_1 = arith.constant 0 : i32
    %c0_i32_2 = arith.constant 0 : i32
    return %arg0, %c0_i32, %c0_i32_0, %c0_i32_1 : i32, i32, i32, i32
  }
  func.func @transform_5(%arg0: i32) -> (i32, i32, i32, i32) {
    %c0_i32 = arith.constant 0 : i32
    %c0_i32_0 = arith.constant 0 : i32
    %c0_i32_1 = arith.constant 0 : i32
    %c0_i32_2 = arith.constant 0 : i32
    return %arg0, %c0_i32, %c0_i32_0, %c0_i32_1 : i32, i32, i32, i32
  }
  func.func @transform_6(%arg0: i32) -> (i32, i32, i32, i32) {
    %c0_i32 = arith.constant 0 : i32
    %c0_i32_0 = arith.constant 0 : i32
    %c0_i32_1 = arith.constant 0 : i32
    %c0_i32_2 = arith.constant 0 : i32
    return %arg0, %c0_i32, %c0_i32_0, %c0_i32_1 : i32, i32, i32, i32
  }
  func.func @transform_7(%arg0: i32) -> (i32, i32, i32) {
    %c0_i32 = arith.constant 0 : i32
    %c0_i32_0 = arith.constant 0 : i32
    %c0_i32_1 = arith.constant 0 : i32
    return %arg0, %c0_i32, %c0_i32_0 : i32, i32, i32
  }
  func.func @transform_8(%arg0: i32) -> (i32, i32, i32) {
    %c0_i32 = arith.constant 0 : i32
    %c0_i32_0 = arith.constant 0 : i32
    %c0_i32_1 = arith.constant 0 : i32
    return %arg0, %c0_i32, %c0_i32_0 : i32, i32, i32
  }
  func.func @transform_9(%arg0: i32) -> (i32, i32, i32) {
    %c0_i32 = arith.constant 0 : i32
    %c0_i32_0 = arith.constant 0 : i32
    %c0_i32_1 = arith.constant 0 : i32
    return %arg0, %c0_i32, %c0_i32_0 : i32, i32, i32
  }
  func.func @transform_10(%arg0: i32) -> (i32, i32, i32) {
    %c0_i32 = arith.constant 0 : i32
    %c0_i32_0 = arith.constant 0 : i32
    %c0_i32_1 = arith.constant 0 : i32
    %c0_i32_2 = arith.constant 0 : i32
    return %c0_i32, %c0_i32_0, %c0_i32_1 : i32, i32, i32
  }
}

</mosaic_0001>

<bundles_post_ra>
// kernel: decoder_forward.1
= control target key start
LH: loop header
LB: loop body
LE: loop exit
PB: predicated region body
PF: predicated region fallthrough
CT: control target
= control target key end

     0   :  { %s4022_s0 = inlined_call_operand.vmem [shape: f32[2,8,32], index: 0, kind: input, shape index: {}]   ;;  %s4023_s1 = inlined_call_operand.vmem [shape: f32[8,16], index: 1, kind: input, shape index: {}]   ;;  %s4024_s2 = inlined_call_operand.vmem [shape: f32[8,16], index: 2, kind: input, shape index: {}]   ;;  %s4025_s3 = inlined_call_operand.vmem [shape: bf16[2,4,32,8], index: 3, kind: input, shape index: {}]   ;;  %s4026_s4 = inlined_call_operand.vmem [shape: bf16[2,4,32,8], index: 4, kind: input, shape index: {}]   ;;  %s4027_s5 = inlined_call_operand.vmem [shape: bf16[2,4,32,8], index: 5, kind: input, shape index: {}]   ;;  %s4028_s6 = inlined_call_operand.vmem [shape: bf16[2,4,8,32], index: 6, kind: input, shape index: {}]   ;;  %s4029_s7 = inlined_call_operand.vmem [shape: bf16[2,32,64], index: 7, kind: input, shape index: {}]   ;;  %s4030_s8 = inlined_call_operand.vmem [shape: bf16[2,64,32], index: 8, kind: input, shape index: {}]   ;;  %s4031_s9 = inlined_call_operand.vmem [shape: f32[2,10,64], index: 9, kind: input, shape index: {}]   ;;  %s4032_s10 = inlined_call_operand.hbm [shape: f32[2,8,32], index: 10, kind: output, shape index: {}]  }
   0x1   :  { %4033 = sst [smem:[#allocation7_spill]] %s4025_s3 }
   0x2   :  { %15 = vsyncpa [#allocation5], 0  ;;  %s3567_s13 = smov 0  }
   0x3 LB: > { %s3573_s14 = sadd.s32 4294967295, %s3499_s13   ;;  %p2880_p0 = scmp.ge.s32.totalorder %s3499_s13, 1  ;;  %s3499_s13 = sphi %s3567_s13, %s21_s13  }
   0x4   : > { %p368_p1 = scmp.lt.s32.totalorder %s3499_s13, 3 }
   0x6   : > { %p369_p2 = pnand %p2880_p0, %p368_p1 }
   0x7   : > { %p431_p3 = scmp.lt.s32.totalorder (!%p369_p2), %s3573_s14, 1  ;;  %s4034_s3 = sld [smem:[#allocation7_spill]] (!%p369_p2) }
   0x8   : > { %372 = sbr.rel (%p369_p2) target bundleno = 6732 (0x1a4c), region = 60  ;;  %p2895_p4 = scmp.ne.s32.totalorder (!%p369_p2), %s3573_s14, 0 }
   0xd   : > { %s432_s15 = scalar_select %p431_p3, %s3573_s14, 1 }
   0xe   : > { %s3501_s28 = smov (!%p2895_p4), 16   ;;  %s3503_s19 = smov (!%p2895_p4), 112  }
   0xf   : > { %s3008_s16 = sshll.u32 %s432_s15, 6  ;;  %s3011_s17 = sshll.u32 %s432_s15, 4 }
  0x10   : > { %s3582_s20 = scalar_lea.vmem %s4034_s3, %s3008_s16  ;;  %s3587_s23 = scalar_lea.vmem %s4026_s4, %s3008_s16 }
  0x11   : > { %s3592_s26 = scalar_lea.vmem %s4027_s5, %s3008_s16  ;;  %s3597_s29 = scalar_lea.vmem %s4028_s6, %s3011_s17 }
  0x12   : > { %s3602_s12 = scalar_lea.vmem %s4029_s7, %s3011_s17  ;;  %s3013_s18 = sshll.u32 %s432_s15, 5 }
  0x13   : > { %s3607_s22 = scalar_lea.vmem %s4030_s8, %s3013_s18  ;;  %s3612_s16 = scalar_lea.vmem %s4031_s9, %s3011_s17 }
  0x14   : > { %470 = sbr.rel (%p2895_p4) target bundleno = 270 (0x10e), region = 64 }
  0x19   : > { %v476_v0 = vld [vmem:[%s4024_s2] sm:$0xff]  ;;  %v519_v5 = vlaneseq  ;;  %v472_v8 = vld [vmem:[%s4022_s0 + $0x8] sm:$0xff]  ;;  %v3502_v10 = vmov -1e+09   ;;  %vm525_vm1 = vcmask 64512   ;;  %vm513_vm2 = vcmask 130048  }
  0x1a   : > { %480 = vrot.lane.b32.xlu0 %v476_v0, %s3501_s28  ;;  %v471_v1 = vld [vmem:[%s4022_s0] sm:$0xff]  ;;  %v474_v12 = vmul.f32 5.656854, %v472_v8  ;;  %vm516_vm3 = vcmask 261120  }
  0x1b   : > { %v475_v2 = vld [vmem:[%s4023_s1] sm:$0xff]  ;;  %v473_v3 = vmul.f32 5.656854, %v471_v1  ;;  %v520_v6 = vshrl.u32 %v519_v5, 7  ;;  %v522_v7 = vand.u32 127, %v519_v5 }
  0x1c   : > { %v502_v15 = vmul.f32 %v476_v0, %v474_v12  ;;  %v478_v25 = vmul.f32 %v475_v2, %v474_v12 }
  0x1d   : > { %v501_v4 = vmul.f32 %v476_v0, %v473_v3  ;;  %vm523_vm0 = vcmp.ge.s32.totalorder %v520_v6, %v522_v7  ;;  %v477_v19 = vmul.f32 %v475_v2, %v473_v3 }
  0x1e   : > { %496 = vrot.lane.b32.xlu0 %v475_v2, %s3501_s28  ;;  %v524_v11 = vsel %vm523_vm0, 0.0, %v3502_v10 }
  0x1f   : > { %526 = vst.msk [vmem:[#allocation3] sm:$0xff] %vm525_vm1, %v524_v11 }
  0x22   : > { %505 = vrot.lane.b32.xlu0 %v501_v4, %s3501_s28 }
  0x8c   : > { %v481_v9 = vpop.permute.xlu0 %480 }
  0x8d   : > { %v483_v13 = vmul.f32 %v481_v9, %v473_v3  ;;  %v484_v14 = vmul.f32 %v481_v9, %v474_v12 }
  0x8f   : > { %487 = vrot.lane.b32.xlu1 %v483_v13, %s3503_s19 }
  0x90   : > { %v497_v16 = vpop.permute.xlu0 %496 }
  0x91   : > { %v499_v17 = vmul.f32 %v497_v16, %v473_v3  ;;  %v500_v26 = vmul.f32 %v497_v16, %v474_v12 }
  0x93   : > { %489 = vrot.lane.b32.xlu1 %v484_v14, %s3503_s19 }
  0x94   : > { %v506_v18 = vpop.permute.xlu0 %505 }
  0x95   : > { %v511_v20 = vadd.f32 %v506_v18, %v499_v17 }
  0x97   : > { %507 = vrot.lane.b32.xlu1 %v502_v15, %s3501_s28 }
 0x101   : > { %v488_v21 = vpop.permute.xlu1 %487 }
 0x102   : > { %v493_v22 = vsub.f32 %v477_v19, %v488_v21 }
 0x104   : > { %v514_v23 = vsel %vm513_vm2, %v493_v22, %v511_v20 }
 0x105   : > { %517 = vst.msk [vmem:[#allocation2] sm:$0xff] %vm516_vm3, %v514_v23  ;;  %v490_v24 = vpop.permute.xlu1 %489 }
 0x106   : > { %v494_v28 = vsub.f32 %v478_v25, %v490_v24 }
 0x109   : > { %v508_v27 = vpop.permute.xlu1 %507 }
 0x10a   : > { %v512_v29 = vadd.f32 %v508_v27, %v500_v26 }
 0x10c   : > { %v515_v30 = vsel %vm513_vm2, %v494_v28, %v512_v29 }
 0x10d   : > { %518 = vst.msk [vmem:[#allocation2 + $0x8] sm:$0xff] %vm516_vm3, %v515_v30 }
 0x10e PF: > { %v3392_v31 = vld [vmem:[%s3582_s20 + $0x8] sm:$0xff]   ;;  %v3504_v32 = vmov 0.0   ;;  %v3394_v34 = vld [vmem:[%s3582_s20] sm:$0xff]   ;;  %vm3505_vm4 = vmmov 0   ;;  %vm553_vm5 = vcmask 261120   ;;  %v537_v39 = vlaneseq  ;;  %v3690_v4 = vld [vmem:[#allocation3] sm:$0xff] }
 0x10f   : > { %3107 = vmatprep.subr.bf16.mxu0 %v3504_v32  ;;  %3115 = vmatprep.subr.bf16.mxu1 %v3504_v32  ;;  %v3393_v33 = vld [vmem:[%s3587_s23 + $0x8] sm:$0xff]   ;;  %v3395_v35 = vld [vmem:[%s3587_s23] sm:$0xff]   ;;  %vm725_vm6 = vcmask 64512   ;;  %vm787_vm7 = vcmask 1043456   ;;  %s3506_s21 = smov 120   ;;  %s3507_s24 = smov 112  }
 0x110   : > { %3108 = vmatpush3.bf16.msra.mxu0 %v3392_v31  ;;  %3111 = vmatprep.mubr.msk.bf16.mxu0 %vm3505_vm4, %v3504_v32  ;;  %v527_v36 = vld [vmem:[#allocation2] sm:$0xff]  ;;  %v3651_v40 = vshrl.u32 %v537_v39, 7  ;;  %v3396_v2 = vld [vmem:[%s3592_s26 + $0x8] sm:$0xff]   ;;  %v3400_v39 = vld [vmem:[%s3582_s20 + $0x10] sm:$0xff]   ;;  %s3508_s25 = smov 104   ;;  %vm2664_vm8 = vcmask 523264  }
 0x111   : > { %3116 = vmatpush3.bf16.msra.mxu1 %v3393_v33  ;;  %3109 = vmatprep.subr.bf16.mxu0 %v3504_v32  ;;  %v3656_v43 = vld [vmem:[%s3612_s16] sm:$0xff]  ;;  %p3003_p5 = scmp.ne.s32.totalorder %s3573_s14, 1 }
 0x112   : > { %3117 = vmatprep.subr.bf16.mxu1 %v3504_v32  ;;  %3119 = vmatprep.mubr.msk.bf16.mxu1 %vm3505_vm4, %v3504_v32  ;;  %v539_v41 = vsub.s32 0, %v3651_v40  ;;  %v606_v42 = vsub.s32 1, %v3651_v40  ;;  %v3397_v3 = vld [vmem:[%s3592_s26] sm:$0xff]   ;;  %v667_v27 = vsub.s32 2, %v3651_v40 }
 0x114   : > { %v528_v37 = vld [vmem:[#allocation2 + $0x8] sm:$0xff]  ;;  %3110 = vmatpush3.bf16.msra.mxu0 %v3394_v34  ;;  %v3661_v44 = vrot.slane %v3656_v43, %v539_v41  ;;  %v3666_v45 = vrot.slane %v3656_v43, %v606_v42  ;;  %v3700_v29 = vrot.slane %v3656_v43, %v667_v27 }
 0x115   : > { %v3639_v38 = vpack.c.bf16 %v528_v37, %v527_v36  ;;  %3118 = vmatpush3.bf16.msra.mxu1 %v3395_v35  ;;  %3123 = vmatprep.subr.bf16.mxu0 %v3504_v32  ;;  %v3398_v37 = vld [vmem:[%s3582_s20 + $0x18] sm:$0xff]  }
 0x116   : > { %3131 = vmatprep.subr.bf16.mxu1 %v3504_v32 }
 0x117   : > { %3112 = vmatmul.mubr.msk.bf16.vlgmr.msra.gmra.mxu0 %vm553_vm5, %v3639_v38 }
 0x118   : > { %3120 = vmatmul.mubr.msk.bf16.vlgmr.msra.gmra.mxu1 %vm553_vm5, %v3639_v38  ;;  %3127 = vmatprep.mubr.msk.bf16.mxu0 %vm3505_vm4, %v3504_v32 }
 0x119   : > { %3133 = vmatprep.mubr.msk.bf16.mxu1 %vm3505_vm4, %v3504_v32  ;;  %3124 = vmatpush3.bf16.msra.mxu0 %v3396_v2 }
 0x11a   : > { %3125 = vmatprep.subr.bf16.mxu0 %v3504_v32 }
 0x11d   : > { %3126 = vmatpush3.bf16.msra.mxu0 %v3397_v3 }
 0x11e   : > { %3137 = vmatprep.subr.bf16.mxu0 %v3504_v32 }
 0x120   : > { %3128 = vmatmul.mubr.msk.bf16.vlgmr.msra.gmra.mxu0 %vm553_vm5, %v3639_v38 }
 0x121   : > { %3139 = vmatprep.mubr.msk.bf16.mxu0 %vm3505_vm4, %v3504_v32 }
 0x1d7   : > { %v591_v46 = vpop.f32.mrf.mxu0 }
 0x1d8   : > { %v654_v47 = vpop.f32.mrf.mxu1  ;;  %v592_v48 = vadd.f32 %v591_v46, %v3661_v44 }
 0x1d9   : > { %v655_v49 = vadd.f32 %v654_v47, %v3666_v45  ;;  %v3113_v50 = vpop.f32.mrf.mxu0 }
 0x1da   : > { %v3121_v51 = vpop.f32.mrf.mxu1  ;;  %v598_v55 = vmul.f32 0.35355338, %v592_v48 }
 0x1db   : > { %v723_v52 = vpack.c.bf16 %v655_v49, %v655_v49  ;;  %v594_v53 = vpop.f32.mrf.mxu0 }
 0x1dc   : > { %v657_v54 = vpop.f32.mrf.mxu1  ;;  %v722_v60 = vpack.c.bf16 %v598_v55, %v598_v55  ;;  %v595_v62 = vadd.f32 %v594_v53, %v3661_v44  ;;  %v3399_v55 = vld [vmem:[%s3587_s23 + $0x18] sm:$0xff]  }
 0x1dd   : > { %v730_v56 = vsel %vm725_vm6, %v723_v52, 0  ;;  %v658_v57 = vadd.f32 %v657_v54, %v3666_v45  ;;  %v3114_v58 = vpop.f32.mrf.mxu0 }
 0x1de   : > { %v3122_v59 = vpop.f32.mrf.mxu1  ;;  %3132 = vmatpush3.bf16.xpose.msra.mxu1 %v730_v56  ;;  %v599_v0 = vmul.f32 0.35355338, %v595_v62 }
 0x1df   : > { %3143 = vmatprep.subr.bf16.mxu1 %v3504_v32  ;;  %v834_v61 = vpack.c.bf16 %v658_v57, %v658_v57  ;;  %v3401_v57 = vld [vmem:[%s3587_s23 + $0x10] sm:$0xff]  }
 0x1e0   : > { %v833_v1 = vpack.c.bf16 %v599_v0, %v599_v0  ;;  %v715_v28 = vpop.f32.mrf.mxu0 }
 0x1e1   : > { %v840_v63 = vsel %vm725_vm6, %v834_v61, 0  ;;  %v716_v31 = vadd.f32 %v715_v28, %v3700_v29 }
 0x1e2   : > { %v3129_v30 = vpop.f32.mrf.mxu0 }
 0x1e3   : > { %v724_v34 = vpack.c.bf16 %v716_v31, %v716_v31 }
 0x1e4   : > { %v718_v33 = vpop.f32.mrf.mxu0 }
 0x1e5   : > { %3134 = vmatmul.mubr.msk.bf16.vlgmr.msra.gmra.mxu1 %vm725_vm6, %v722_v60  ;;  %v789_v36 = vsel %vm787_vm7, %v724_v34, 0  ;;  %v719_v47 = vadd.f32 %v718_v33, %v3700_v29 }
 0x1e6   : > { %3144 = vmatpush3.bf16.xpose.msra.mxu1 %v840_v63  ;;  %3145 = vmatprep.mubr.msk.bf16.mxu1 %vm3505_vm4, %v3504_v32  ;;  %v3130_v35 = vpop.f32.mrf.mxu0 }
 0x1e7   : > { %3155 = vmatprep.subr.bf16.mxu1 %v3504_v32  ;;  %3138 = vmatpush3.bf16.msra.mxu0 %v789_v36  ;;  %v835_v49 = vpack.c.bf16 %v719_v47, %v719_v47 }
 0x1e8   : > { %3149 = vmatprep.subr.bf16.mxu0 %v3504_v32 }
 0x1e9   : > { %v898_v52 = vsel %vm787_vm7, %v835_v49, 0 }
 0x1ed   : > { %3146 = vmatmul.mubr.msk.bf16.vlgmr.msra.gmra.mxu1 %vm725_vm6, %v833_v1 }
 0x1ee   : > { %3159 = vmatprep.mubr.msk.bf16.mxu1 %vm3505_vm4, %v3504_v32  ;;  %3156 = vmatpush3.bf16.msra.mxu1 %v3398_v37 }
 0x1ef   : > { %3157 = vmatprep.subr.bf16.mxu1 %v3504_v32 }
 0x1f2   : > { %3158 = vmatpush3.bf16.msra.mxu1 %v3400_v39  ;;  %v2932_v39 = vld [vmem:[%s3597_s29 + $0x4] sm:$0xf] }
 0x1f3   : > { %3171 = vmatprep.subr.bf16.mxu1 %v3504_v32 }
 0x1f5   : > { %3160 = vmatmul.mubr.msk.bf16.vlgmr.msra.gmra.mxu1 %vm553_vm5, %v3639_v38 }
 0x1f6   : > { %3175 = vmatprep.mubr.msk.bf16.mxu1 %vm3505_vm4, %v3504_v32 }
 0x2a5   : > { %v766_v5 = vpop.f32.mrf.mxu1 }
 0x2a6   : > { %v767_v6 = vadd.f32 %v766_v5, %v3690_v4 }
 0x2a7   : > { %v3135_v7 = vpop.f32.mrf.mxu1 }
 0x2a8   : > { %v772_v8 = vsel %vm725_vm6, %v767_v6, -inf }
 0x2a9   : > { %773 = vmax.xlane.f32.xlu0 %v772_v8  ;;  %v769_v9 = vpop.f32.mrf.mxu1 }
 0x2ab   : > { %v3136_v10 = vpop.f32.mrf.mxu1 }
 0x2ad   : > { %v876_v11 = vpop.f32.mrf.mxu1 }
 0x2ae   : > { %v877_v12 = vadd.f32 %v876_v11, %v3690_v4 }
 0x2af   : > { %v3147_v13 = vpop.f32.mrf.mxu1 }
 0x2b0   : > { %v882_v14 = vsel %vm725_vm6, %v877_v12, -inf }
 0x2b1   : > { %883 = vmax.xlane.f32.xlu0 %v882_v14  ;;  %v879_v15 = vpop.f32.mrf.mxu1 }
 0x2b3   : > { %v3148_v16 = vpop.f32.mrf.mxu1 }
 0x2b5   : > { %v996_v58 = vpop.f32.mrf.mxu1 }
 0x2b7   : > { %v3161_v59 = vpop.f32.mrf.mxu1 }
 0x2b9   : > { %v3734_v60 = vpop.f32.mrf.mxu1 }
 0x2bb   : > { %v3162_v61 = vpop.f32.mrf.mxu1 }
 0x2c7   : > { %1023 = vrot.lane.b32.xlu0 %v3666_v45, %s3506_s21 }
 0x332   : > { %v774_v17 = vpop.xlane.xlu0 %773 }
 0x333   : > { %v775_v18 = vsub.f32 %v767_v6, %v774_v17 }
 0x335   : > { %v776_v19 = vmul.f32 1.442695, %v775_v18 }
 0x337   : > { %3422 = vpow2.f32 %v776_v19  ;;  %v3402_v19 = vld [vmem:[%s3592_s26 + $0x18] sm:$0xff]  }
 0x338   : > { %3172 = vmatpush3.bf16.msra.mxu1 %v3402_v19 }
 0x339   : > { %3173 = vmatprep.subr.bf16.mxu1 %v3504_v32 }
 0x33a   : > { %v884_v20 = vpop.xlane.xlu0 %883 }
 0x33b   : > { %v885_v21 = vsub.f32 %v877_v12, %v884_v20  ;;  %v3403_v20 = vld [vmem:[%s3592_s26 + $0x10] sm:$0xff]  }
 0x33c   : > { %3174 = vmatpush3.bf16.msra.mxu1 %v3403_v20 }
 0x33d   : > { %v886_v22 = vmul.f32 1.442695, %v885_v21  ;;  %3185 = vmatprep.subr.bf16.mxu1 %v3504_v32 }
 0x33e   : > { %v3740_v6 = vpop.permute.xlu0 %1023 }
 0x33f   : > { %3424 = vpow2.f32 %v886_v22  ;;  %3176 = vmatmul.mubr.msk.bf16.vlgmr.msra.gmra.mxu1 %vm553_vm5, %v3639_v38 }
 0x340   : > { %3187 = vmatprep.mubr.msk.bf16.mxu1 %vm3505_vm4, %v3504_v32 }
 0x344   : > { %v3423_v23 = vpop.eup %3422 }
 0x345   : > { %v778_v24 = vsel %vm725_vm6, %v3423_v23, 0.0 }
 0x346   : > { %779 = vadd.xlane.f32.xlu1 %v778_v24 }
 0x34c   : > { %v3425_v25 = vpop.eup %3424 }
 0x34d   : > { %v888_v26 = vsel %vm725_vm6, %v3425_v25, 0.0 }
 0x34e   : > { %889 = vadd.xlane.f32.xlu1 %v888_v26 }
 0x35f   : > { %959 = vrot.lane.b32.xlu1 %v3661_v44, %s3506_s21 }
 0x3cf   : > { %v780_v43 = vpop.xlane.xlu1 %779 }
 0x3d0   : > { %3426 = vrcp.f32 %v780_v43  ;;  %v1243_v43 = vsel %vm787_vm7, %v2932_v39, 0 }
 0x3d7   : > { %v890_v46 = vpop.xlane.xlu1 %889 }
 0x3d8   : > { %3428 = vrcp.f32 %v890_v46 }
 0x3db   : > { %v3742_v8 = vpop.permute.xlu1 %959 }
 0x3dc   : > { %v997_v11 = vadd.f32 %v996_v58, %v3742_v8 }
 0x3dd   : > { %v3427_v48 = vpop.eup %3426 }
 0x3de   : > { %v782_v50 = vmul.f32 %v3427_v48, %v3423_v23  ;;  %v1003_v16 = vmul.f32 0.35355338, %v997_v11 }
 0x3e0   : > { %v783_v51 = vpack.c.bf16 %v782_v50, %v782_v50  ;;  %v1129_v18 = vpack.c.bf16 %v1003_v16, %v1003_v16 }
 0x3e2   : > { %3140 = vmatmul.mubr.msk.bf16.vlgmr.msra.gmra.mxu0 %vm725_vm6, %v783_v51 }
 0x3e3   : > { %3150 = vmatpush3.bf16.msra.mxu0 %v898_v52  ;;  %3151 = vmatprep.mubr.msk.bf16.mxu0 %vm3505_vm4, %v3504_v32  ;;  %v832_v52 = vld [vmem:[%s3597_s29] sm:$0xf] }
 0x3e4   : > { %3163 = vmatprep.subr.bf16.mxu0 %v3504_v32 }
 0x3e5   : > { %v3429_v53 = vpop.eup %3428 }
 0x3e6   : > { %v892_v54 = vmul.f32 %v3429_v53, %v3425_v25 }
 0x3e8   : > { %v893_v56 = vpack.c.bf16 %v892_v54, %v892_v54 }
 0x3ea   : > { %3152 = vmatmul.mubr.msk.bf16.vlgmr.msra.gmra.mxu0 %vm725_vm6, %v893_v56 }
 0x3eb   : > { %3164 = vmatpush3.bf16.msra.mxu0 %v3399_v55  ;;  %3167 = vmatprep.mubr.msk.bf16.mxu0 %vm3505_vm4, %v3504_v32  ;;  %v1289_v55 = vsel %vm787_vm7, %v832_v52, 0 }
 0x3ec   : > { %3165 = vmatprep.subr.bf16.mxu0 %v3504_v32 }
 0x3ef   : > { %3166 = vmatpush3.bf16.msra.mxu0 %v3401_v57 }
 0x3f0   : > { %3179 = vmatprep.subr.bf16.mxu0 %v3504_v32 }
 0x3f2   : > { %3168 = vmatmul.mubr.msk.bf16.vlgmr.msra.gmra.mxu0 %vm553_vm5, %v3639_v38 }
 0x3f3   : > { %3181 = vmatprep.mubr.msk.bf16.mxu0 %vm3505_vm4, %v3504_v32 }
 0x3ff   : > { %v1122_v27 = vpop.f32.mrf.mxu1 }
 0x401   : > { %v3177_v28 = vpop.f32.mrf.mxu1 }
 0x403   : > { %v1125_v36 = vpop.f32.mrf.mxu1 }
 0x405   : > { %v3178_v37 = vpop.f32.mrf.mxu1 }
 0x406   : > { %v3406_v37 = vld [vmem:[%s3582_s20 + $0x28] sm:$0xff]  }
 0x4a2   : > { %v3736_v62 = vpop.f32.mrf.mxu0 }
 0x4a3   : > { %v831_v58 = vpack.c.bf16 %v3736_v62, %v3736_v62 }
 0x4a4   : > { %v3141_v63 = vpop.f32.mrf.mxu0 }
 0x4a6   : > { %v828_v0 = vpop.f32.mrf.mxu0 }
 0x4a8   : > { %v3142_v1 = vpop.f32.mrf.mxu0 }
 0x4a9   : > { %v1000_v1 = vadd.f32 %v3734_v60, %v3742_v8 }
 0x4aa   : > { %v3738_v2 = vpop.f32.mrf.mxu0 }
 0x4ac   : > { %v3153_v3 = vpop.f32.mrf.mxu0 }
 0x4ae   : > { %v937_v5 = vpop.f32.mrf.mxu0 }
 0x4b0   : > { %v3154_v7 = vpop.f32.mrf.mxu0 }
 0x4b2   : > { %v1060_v9 = vpop.f32.mrf.mxu0 }
 0x4b3   : > { %v1061_v10 = vadd.f32 %v1060_v9, %v3740_v6  ;;  %v1004_v9 = vmul.f32 0.35355338, %v1000_v1 }
 0x4b4   : > { %v3169_v12 = vpop.f32.mrf.mxu0 }
 0x4b5   : > { %v1130_v13 = vpack.c.bf16 %v1061_v10, %v1061_v10  ;;  %v1331_v11 = vpack.c.bf16 %v1004_v9, %v1004_v9 }
 0x4b6   : > { %v3746_v14 = vpop.f32.mrf.mxu0 }
 0x4b7   : > { %v1136_v15 = vsel %vm725_vm6, %v1130_v13, 0  ;;  %v1064_v61 = vadd.f32 %v3746_v14, %v3740_v6 }
 0x4b8   : > { %v3170_v17 = vpop.f32.mrf.mxu0  ;;  %3180 = vmatpush3.bf16.xpose.msra.mxu0 %v1136_v15 }
 0x4b9   : > { %3191 = vmatprep.subr.bf16.mxu0 %v3504_v32  ;;  %v1332_v63 = vpack.c.bf16 %v1064_v61, %v1064_v61 }
 0x4bb   : > { %v1338_v5 = vsel %vm725_vm6, %v1332_v63, 0 }
 0x4bf   : > { %3182 = vmatmul.mubr.msk.bf16.vlgmr.msra.gmra.mxu0 %vm725_vm6, %v1129_v18 }
 0x4c0   : > { %3193 = vmatprep.mubr.msk.bf16.mxu0 %vm3505_vm4, %v3504_v32  ;;  %3192 = vmatpush3.bf16.msra.mxu0 %v1243_v43 }
 0x4c1   : > { %3203 = vmatprep.subr.bf16.mxu0 %v3504_v32 }
 0x57f   : > { %v1172_v21 = vpop.f32.mrf.mxu0 }
 0x580   : > { %v1173_v22 = vadd.f32 %v1172_v21, %v3690_v4 }
 0x581   : > { %v3183_v23 = vpop.f32.mrf.mxu0 }
 0x582   : > { %v1178_v24 = vsel %vm725_vm6, %v1173_v22, -inf }
 0x583   : > { %1179 = vmax.xlane.f32.xlu1 %v1178_v24  ;;  %v1175_v25 = vpop.f32.mrf.mxu0 }
 0x585   : > { %v3184_v26 = vpop.f32.mrf.mxu0 }
 0x60c   : > { %v1180_v30 = vpop.xlane.xlu1 %1179 }
 0x60d   : > { %v1181_v31 = vsub.f32 %v1173_v22, %v1180_v30 }
 0x60f   : > { %v1182_v33 = vmul.f32 1.442695, %v1181_v31 }
 0x611   : > { %3430 = vpow2.f32 %v1182_v33 }
 0x61e   : > { %v3431_v34 = vpop.eup %3430 }
 0x61f   : > { %v1184_v35 = vsel %vm725_vm6, %v3431_v34, 0.0 }
 0x620   : > { %1185 = vadd.xlane.f32.xlu0 %v1184_v35  ;;  %v940_v35 = vpack.c.bf16 %v3738_v2, %v3738_v2 }
 0x636   : > { %1085 = vrot.lane.b32.xlu0 %v3700_v29, %s3506_s21 }
 0x63a   : > { %1542 = vrot.lane.b32.xlu0 %v3661_v44, %s3507_s24 }
 0x6a9   : > { %v1186_v46 = vpop.xlane.xlu0 %1185 }
 0x6aa   : > { %3432 = vrcp.f32 %v1186_v46 }
 0x6ad   : > { %v1086_v47 = vpop.permute.xlu0 %1085 }
 0x6ae   : > { %v1123_v48 = vadd.f32 %v1122_v27, %v1086_v47  ;;  %v1126_v56 = vadd.f32 %v1125_v36, %v1086_v47  ;;  %v3405_v36 = vld [vmem:[%s3587_s23 + $0x20] sm:$0xff]  }
 0x6af   : > { %v3407_v47 = vld [vmem:[%s3582_s20 + $0x20] sm:$0xff]  }
 0x6b0   : > { %v1131_v49 = vpack.c.bf16 %v1123_v48, %v1123_v48  ;;  %v1333_v57 = vpack.c.bf16 %v1126_v56, %v1126_v56 }
 0x6b2   : > { %v1194_v50 = vsel %vm787_vm7, %v1131_v49, 0  ;;  %v1396_v59 = vsel %vm787_vm7, %v1333_v57, 0 }
 0x6b3   : > { %3186 = vmatpush3.bf16.msra.mxu1 %v1194_v50 }
 0x6b4   : > { %3197 = vmatprep.subr.bf16.mxu1 %v3504_v32 }
 0x6b7   : > { %v3433_v51 = vpop.eup %3432 }
 0x6b8   : > { %v1188_v53 = vmul.f32 %v3433_v51, %v3431_v34  ;;  %v3404_v34 = vld [vmem:[%s3587_s23 + $0x28] sm:$0xff]  }
 0x6ba   : > { %v1189_v54 = vpack.c.bf16 %v1188_v53, %v1188_v53 }
 0x6bc   : > { %3188 = vmatmul.mubr.msk.bf16.vlgmr.msra.gmra.mxu1 %vm725_vm6, %v1189_v54 }
 0x6bd   : > { %3198 = vmatpush3.bf16.msra.mxu1 %v1289_v55  ;;  %3199 = vmatprep.mubr.msk.bf16.mxu1 %vm3505_vm4, %v3504_v32 }
 0x6be   : > { %3209 = vmatprep.subr.bf16.mxu1 %v3504_v32 }
 0x6c4   : > { %3200 = vmatmul.mubr.msk.bf16.vlgmr.msra.gmra.mxu1 %vm725_vm6, %v831_v58 }
 0x6c5   : > { %3210 = vmatpush3.bf16.msra.mxu1 %v1396_v59  ;;  %3211 = vmatprep.mubr.msk.bf16.mxu1 %vm3505_vm4, %v3504_v32 }
 0x6c6   : > { %3221 = vmatprep.subr.bf16.mxu1 %v3504_v32 }
 0x77c   : > { %v1230_v0 = vpop.f32.mrf.mxu1 }
 0x77d   : > { %v1236_v3 = vpack.c.bf16 %v1230_v0, %v1230_v0 }
 0x77e   : > { %v3189_v62 = vpop.f32.mrf.mxu1 }
 0x77f   : > { %3194 = vmatmul.mubr.msk.bf16.vlgmr.msra.gmra.mxu0 %vm725_vm6, %v1236_v3  ;;  %v1543_v62 = vpop.permute.xlu0 %1542 }
 0x780   : > { %3204 = vmatpush3.bf16.xpose.msra.mxu0 %v1338_v5  ;;  %v1233_v7 = vpop.f32.mrf.mxu1  ;;  %3205 = vmatprep.mubr.msk.bf16.mxu0 %vm3505_vm4, %v3504_v32 }
 0x781   : > { %3215 = vmatprep.subr.bf16.mxu0 %v3504_v32 }
 0x782   : > { %v3190_v6 = vpop.f32.mrf.mxu1 }
 0x784   : > { %v3793_v10 = vpop.f32.mrf.mxu1 }
 0x786   : > { %v3201_v12 = vpop.f32.mrf.mxu1 }
 0x787   : > { %3206 = vmatmul.mubr.msk.bf16.vlgmr.msra.gmra.mxu0 %vm725_vm6, %v1331_v11 }
 0x788   : > { %v1328_v60 = vpop.f32.mrf.mxu1  ;;  %3216 = vmatpush3.bf16.msra.mxu0 %v1243_v43  ;;  %3217 = vmatprep.mubr.msk.bf16.mxu0 %vm3505_vm4, %v3504_v32 }
 0x789   : > { %3227 = vmatprep.subr.bf16.mxu0 %v3504_v32 }
 0x78a   : > { %v3202_v8 = vpop.f32.mrf.mxu1 }
 0x78b   : > { %v3408_v8 = vld [vmem:[%s3592_s26 + $0x28] sm:$0xff]  }
 0x83f   : > { %v3799_v13 = vpop.f32.mrf.mxu0 }
 0x841   : > { %v3195_v14 = vpop.f32.mrf.mxu0 }
 0x842   : > { %v3409_v14 = vld [vmem:[%s3592_s26 + $0x20] sm:$0xff]  }
 0x843   : > { %v1282_v15 = vpop.f32.mrf.mxu0 }
 0x845   : > { %v3196_v16 = vpop.f32.mrf.mxu0 }
 0x847   : > { %v1374_v17 = vpop.f32.mrf.mxu0 }
 0x848   : > { %v1375_v18 = vadd.f32 %v1374_v17, %v3690_v4 }
 0x849   : > { %v3207_v19 = vpop.f32.mrf.mxu0 }
 0x84a   : > { %v1380_v20 = vsel %vm725_vm6, %v1375_v18, -inf }
 0x84b   : > { %1381 = vmax.xlane.f32.xlu1 %v1380_v20  ;;  %v1377_v21 = vpop.f32.mrf.mxu0 }
 0x84d   : > { %v3208_v22 = vpop.f32.mrf.mxu0 }
 0x8d4   : > { %v1382_v23 = vpop.xlane.xlu1 %1381 }
 0x8d5   : > { %v1383_v24 = vsub.f32 %v1375_v18, %v1382_v23 }
 0x8d7   : > { %v1384_v25 = vmul.f32 1.442695, %v1383_v24 }
 0x8d9   : > { %3434 = vpow2.f32 %v1384_v25 }
 0x8e6   : > { %v3435_v26 = vpop.eup %3434 }
 0x8e7   : > { %v1386_v27 = vsel %vm725_vm6, %v3435_v26, 0.0 }
 0x8e8   : > { %1387 = vadd.xlane.f32.xlu1 %v1386_v27 }
 0x8f9   : > { %1605 = vrot.lane.b32.xlu1 %v3666_v45, %s3507_s24 }
 0x971   : > { %v1388_v28 = vpop.xlane.xlu1 %1387 }
 0x972   : > { %3436 = vrcp.f32 %v1388_v28 }
 0x975   : > { %v1606_v56 = vpop.permute.xlu1 %1605 }
 0x97f   : > { %v3437_v30 = vpop.eup %3436 }
 0x980   : > { %v1390_v31 = vmul.f32 %v3437_v30, %v3435_v26 }
 0x982   : > { %v1391_v33 = vpack.c.bf16 %v1390_v31, %v1390_v31  ;;  %v2962_v31 = vld [vmem:[%s3597_s29 + $0x8] sm:$0xf] }
 0x984   : > { %3212 = vmatmul.mubr.msk.bf16.vlgmr.msra.gmra.mxu1 %vm725_vm6, %v1391_v33  ;;  %v1824_v33 = vsel %vm787_vm7, %v2962_v31, 0 }
 0x985   : > { %3222 = vmatpush3.bf16.msra.mxu1 %v1289_v55  ;;  %3223 = vmatprep.mubr.msk.bf16.mxu1 %vm3505_vm4, %v3504_v32 }
 0x986   : > { %3235 = vmatprep.subr.bf16.mxu1 %v3504_v32 }
 0x98c   : > { %3224 = vmatmul.mubr.msk.bf16.vlgmr.msra.gmra.mxu1 %vm725_vm6, %v940_v35 }
 0x98d   : > { %3236 = vmatpush3.bf16.msra.mxu1 %v3404_v34  ;;  %3239 = vmatprep.mubr.msk.bf16.mxu1 %vm3505_vm4, %v3504_v32 }
 0x98e   : > { %3237 = vmatprep.subr.bf16.mxu1 %v3504_v32 }
 0x991   : > { %3238 = vmatpush3.bf16.msra.mxu1 %v3405_v36 }
 0x992   : > { %3251 = vmatprep.subr.bf16.mxu1 %v3504_v32 }
 0x994   : > { %3240 = vmatmul.mubr.msk.bf16.vlgmr.msra.gmra.mxu1 %vm553_vm5, %v3639_v38 }
 0x995   : > { %3253 = vmatprep.mubr.msk.bf16.mxu1 %vm3505_vm4, %v3504_v32 }
 0xa44   : > { %v1432_v2 = vpop.f32.mrf.mxu1 }
 0xa45   : > { %v1438_v39 = vpack.c.bf16 %v1432_v2, %v1432_v2 }
 0xa46   : > { %v3213_v43 = vpop.f32.mrf.mxu1 }
 0xa47   : > { %3218 = vmatmul.mubr.msk.bf16.vlgmr.msra.gmra.mxu0 %vm725_vm6, %v1438_v39 }
 0xa48   : > { %v1435_v46 = vpop.f32.mrf.mxu1  ;;  %3228 = vmatpush3.bf16.msra.mxu0 %v3406_v37  ;;  %3231 = vmatprep.mubr.msk.bf16.mxu0 %vm3505_vm4, %v3504_v32 }
 0xa49   : > { %3229 = vmatprep.subr.bf16.mxu0 %v3504_v32 }
 0xa4a   : > { %v3214_v48 = vpop.f32.mrf.mxu1 }
 0xa4c   : > { %v3831_v49 = vpop.f32.mrf.mxu1  ;;  %3230 = vmatpush3.bf16.msra.mxu0 %v3407_v47 }
 0xa4d   : > { %3243 = vmatprep.subr.bf16.mxu0 %v3504_v32 }
 0xa4e   : > { %v3225_v50 = vpop.f32.mrf.mxu1 }
 0xa4f   : > { %3232 = vmatmul.mubr.msk.bf16.vlgmr.msra.gmra.mxu0 %vm553_vm5, %v3639_v38 }
 0xa50   : > { %v1522_v51 = vpop.f32.mrf.mxu1  ;;  %3247 = vmatprep.mubr.msk.bf16.mxu0 %vm3505_vm4, %v3504_v32  ;;  %3244 = vmatpush3.bf16.msra.mxu0 %v3408_v8 }
 0xa51   : > { %3245 = vmatprep.subr.bf16.mxu0 %v3504_v32 }
 0xa52   : > { %v3226_v52 = vpop.f32.mrf.mxu1 }
 0xa54   : > { %v1642_v53 = vpop.f32.mrf.mxu1  ;;  %3246 = vmatpush3.bf16.msra.mxu0 %v3409_v14  ;;  %v1326_v14 = vadd.f32 %v3793_v10, %v3799_v13  ;;  %v3413_v10 = vld [vmem:[%s3582_s20 + $0x30] sm:$0xff]  }
 0xa55   : > { %v1643_v57 = vadd.f32 %v1642_v53, %v1606_v56  ;;  %3257 = vmatprep.subr.bf16.mxu0 %v3504_v32 }
 0xa56   : > { %v3241_v54 = vpop.f32.mrf.mxu1 }
 0xa57   : > { %v1711_v59 = vpack.c.bf16 %v1643_v57, %v1643_v57  ;;  %3248 = vmatmul.mubr.msk.bf16.vlgmr.msra.gmra.mxu0 %vm553_vm5, %v3639_v38 }
 0xa58   : > { %v1645_v55 = vpop.f32.mrf.mxu1  ;;  %3259 = vmatprep.mubr.msk.bf16.mxu0 %vm3505_vm4, %v3504_v32 }
 0xa59   : > { %v1717_v61 = vsel %vm725_vm6, %v1711_v59, 0  ;;  %v1646_v39 = vadd.f32 %v1645_v55, %v1606_v56 }
 0xa5a   : > { %v3242_v58 = vpop.f32.mrf.mxu1  ;;  %3252 = vmatpush3.bf16.xpose.msra.mxu1 %v1717_v61 }
 0xa5b   : > { %3263 = vmatprep.subr.bf16.mxu1 %v3504_v32  ;;  %v1868_v46 = vpack.c.bf16 %v1646_v39, %v1646_v39 }
 0xa5d   : > { %v1874_v51 = vsel %vm725_vm6, %v1868_v46, 0 }
 0xb07   : > { %v3840_v63 = vpop.f32.mrf.mxu0 }
 0xb09   : > { %v3219_v0 = vpop.f32.mrf.mxu0 }
 0xb0b   : > { %v1479_v1 = vpop.f32.mrf.mxu0 }
 0xb0d   : > { %v3220_v3 = vpop.f32.mrf.mxu0 }
 0xb0f   : > { %v1579_v5 = vpop.f32.mrf.mxu0 }
 0xb10   : > { %v1580_v7 = vadd.f32 %v1579_v5, %v1543_v62 }
 0xb11   : > { %v3233_v9 = vpop.f32.mrf.mxu0 }
 0xb12   : > { %v1586_v6 = vmul.f32 0.35355338, %v1580_v7 }
 0xb13   : > { %v1582_v11 = vpop.f32.mrf.mxu0 }
 0xb14   : > { %v1710_v12 = vpack.c.bf16 %v1586_v6, %v1586_v6  ;;  %v1583_v48 = vadd.f32 %v1582_v11, %v1543_v62 }
 0xb15   : > { %v3234_v60 = vpop.f32.mrf.mxu0 }
 0xb16   : > { %3254 = vmatmul.mubr.msk.bf16.vlgmr.msra.gmra.mxu1 %vm725_vm6, %v1710_v12  ;;  %v1587_v52 = vmul.f32 0.35355338, %v1583_v48 }
 0xb17   : > { %3265 = vmatprep.mubr.msk.bf16.mxu1 %vm3505_vm4, %v3504_v32  ;;  %v1703_v26 = vpop.f32.mrf.mxu0  ;;  %3264 = vmatpush3.bf16.msra.mxu1 %v1824_v33 }
 0xb18   : > { %3275 = vmatprep.subr.bf16.mxu1 %v3504_v32  ;;  %v1867_v53 = vpack.c.bf16 %v1587_v52, %v1587_v52 }
 0xb19   : > { %v3249_v27 = vpop.f32.mrf.mxu0 }
 0xb1b   : > { %v1706_v28 = vpop.f32.mrf.mxu0 }
 0xb1d   : > { %v3250_v30 = vpop.f32.mrf.mxu0 }
 0xb1e   : > { %v3412_v30 = vld [vmem:[%s3587_s23 + $0x30] sm:$0xff]  }
 0xbd6   : > { %v1753_v15 = vpop.f32.mrf.mxu1 }
 0xbd7   : > { %v1754_v16 = vadd.f32 %v1753_v15, %v3690_v4 }
 0xbd8   : > { %v3255_v17 = vpop.f32.mrf.mxu1 }
 0xbd9   : > { %v1759_v18 = vsel %vm725_vm6, %v1754_v16, -inf }
 0xbda   : > { %1760 = vmax.xlane.f32.xlu1 %v1759_v18  ;;  %v1756_v19 = vpop.f32.mrf.mxu1 }
 0xbdc   : > { %v3256_v20 = vpop.f32.mrf.mxu1 }
 0xc63   : > { %v1761_v21 = vpop.xlane.xlu1 %1760 }
 0xc64   : > { %v1762_v22 = vsub.f32 %v1754_v16, %v1761_v21 }
 0xc66   : > { %v1763_v23 = vmul.f32 1.442695, %v1762_v22 }
 0xc68   : > { %3438 = vpow2.f32 %v1763_v23 }
 0xc75   : > { %v3439_v24 = vpop.eup %3438 }
 0xc76   : > { %v1765_v25 = vsel %vm725_vm6, %v3439_v24, 0.0 }
 0xc77   : > { %1766 = vadd.xlane.f32.xlu0 %v1765_v25  ;;  %v3410_v25 = vld [vmem:[%s3587_s23 + $0x38] sm:$0xff]  }
 0xc8d   : > { %1666 = vrot.lane.b32.xlu0 %v3700_v29, %s3507_s24 }
 0xc91   : > { %2036 = vrot.lane.b32.xlu0 %v3661_v44, %s3508_s25 }
 0xd00   : > { %v1767_v34 = vpop.xlane.xlu0 %1766 }
 0xd01   : > { %3440 = vrcp.f32 %v1767_v34 }
 0xd04   : > { %v1667_v35 = vpop.permute.xlu0 %1666 }
 0xd05   : > { %v1704_v36 = vadd.f32 %v1703_v26, %v1667_v35  ;;  %v1707_v54 = vadd.f32 %v1706_v28, %v1667_v35  ;;  %v1520_v35 = vadd.f32 %v3831_v49, %v3840_v63 }
 0xd07   : > { %v1712_v2 = vpack.c.bf16 %v1704_v36, %v1704_v36  ;;  %v1869_v55 = vpack.c.bf16 %v1707_v54, %v1707_v54 }
 0xd09   : > { %v1775_v37 = vsel %vm787_vm7, %v1712_v2, 0  ;;  %v1932_v59 = vsel %vm787_vm7, %v1869_v55, 0 }
 0xd0a   : > { %3258 = vmatpush3.bf16.msra.mxu0 %v1775_v37 }
 0xd0b   : > { %3269 = vmatprep.subr.bf16.mxu0 %v3504_v32 }
 0xd0e   : > { %v3441_v43 = vpop.eup %3440 }
 0xd0f   : > { %v1769_v47 = vmul.f32 %v3441_v43, %v3439_v24  ;;  %v3411_v24 = vld [vmem:[%s3582_s20 + $0x38] sm:$0xff]  }
 0xd11   : > { %v1770_v50 = vpack.c.bf16 %v1769_v47, %v1769_v47  ;;  %v2037_v47 = vpop.permute.xlu0 %2036 }
 0xd13   : > { %3260 = vmatmul.mubr.msk.bf16.vlgmr.msra.gmra.mxu0 %vm725_vm6, %v1770_v50 }
 0xd14   : > { %3270 = vmatpush3.bf16.xpose.msra.mxu0 %v1874_v51  ;;  %3271 = vmatprep.mubr.msk.bf16.mxu0 %vm3505_vm4, %v3504_v32 }
 0xd15   : > { %3281 = vmatprep.subr.bf16.mxu0 %v3504_v32 }
 0xd1b   : > { %3272 = vmatmul.mubr.msk.bf16.vlgmr.msra.gmra.mxu0 %vm725_vm6, %v1867_v53 }
 0xd1c   : > { %3282 = vmatpush3.bf16.msra.mxu0 %v1824_v33  ;;  %3283 = vmatprep.mubr.msk.bf16.mxu0 %vm3505_vm4, %v3504_v32 }
 0xd1d   : > { %3295 = vmatprep.subr.bf16.mxu0 %v3504_v32 }
 0xdd3   : > { %v1811_v56 = vpop.f32.mrf.mxu0 }
 0xdd4   : > { %v1817_v57 = vpack.c.bf16 %v1811_v56, %v1811_v56 }
 0xdd5   : > { %v3261_v58 = vpop.f32.mrf.mxu0 }
 0xdd6   : > { %3266 = vmatmul.mubr.msk.bf16.vlgmr.msra.gmra.mxu1 %vm725_vm6, %v1817_v57  ;;  %v3414_v57 = vld [vmem:[%s3592_s26 + $0x38] sm:$0xff]   ;;  %v3415_v58 = vld [vmem:[%s3592_s26 + $0x30] sm:$0xff]  }
 0xdd7   : > { %3276 = vmatpush3.bf16.msra.mxu1 %v1932_v59  ;;  %v1814_v61 = vpop.f32.mrf.mxu0  ;;  %3277 = vmatprep.mubr.msk.bf16.mxu1 %vm3505_vm4, %v3504_v32 }
 0xdd8   : > { %3287 = vmatprep.subr.bf16.mxu1 %v3504_v32 }
 0xdd9   : > { %v3262_v0 = vpop.f32.mrf.mxu0 }
 0xddb   : > { %v1910_v1 = vpop.f32.mrf.mxu0 }
 0xddc   : > { %v1911_v3 = vadd.f32 %v1910_v1, %v3690_v4 }
 0xddd   : > { %v3273_v62 = vpop.f32.mrf.mxu0 }
 0xdde   : > { %v1916_v5 = vsel %vm725_vm6, %v1911_v3, -inf }
 0xddf   : > { %1917 = vmax.xlane.f32.xlu1 %v1916_v5  ;;  %v1913_v7 = vpop.f32.mrf.mxu0 }
 0xde1   : > { %v3274_v9 = vpop.f32.mrf.mxu0 }
 0xe68   : > { %v1918_v6 = vpop.xlane.xlu1 %1917 }
 0xe69   : > { %v1919_v11 = vsub.f32 %v1911_v3, %v1918_v6 }
 0xe6b   : > { %v1920_v12 = vmul.f32 1.442695, %v1919_v11 }
 0xe6d   : > { %3442 = vpow2.f32 %v1920_v12 }
 0xe7a   : > { %v3443_v60 = vpop.eup %3442 }
 0xe7b   : > { %v1922_v8 = vsel %vm725_vm6, %v3443_v60, 0.0 }
 0xe7c   : > { %1923 = vadd.xlane.f32.xlu1 %v1922_v8 }
 0xe8d   : > { %2099 = vrot.lane.b32.xlu1 %v3666_v45, %s3508_s25 }
 0xe96   : > { %v1860_v15 = vpop.f32.mrf.mxu1 }
 0xe97   : > { %v3882_v16 = vadd.f32 %v1860_v15, %v1326_v14 }
 0xe98   : > { %v3267_v17 = vpop.f32.mrf.mxu1 }
 0xe9a   : > { %v1863_v18 = vpop.f32.mrf.mxu1 }
 0xe9c   : > { %v3268_v19 = vpop.f32.mrf.mxu1 }
 0xf05   : > { %v1924_v20 = vpop.xlane.xlu1 %1923 }
 0xf06   : > { %3444 = vrcp.f32 %v1924_v20 }
 0xf09   : > { %v2100_v43 = vpop.permute.xlu1 %2099 }
 0xf13   : > { %v3445_v21 = vpop.eup %3444 }
 0xf14   : > { %v1926_v22 = vmul.f32 %v3445_v21, %v3443_v60 }
 0xf16   : > { %v1927_v23 = vpack.c.bf16 %v1926_v22, %v1926_v22 }
 0xf18   : > { %3278 = vmatmul.mubr.msk.bf16.vlgmr.msra.gmra.mxu1 %vm725_vm6, %v1927_v23 }
 0xf19   : > { %3291 = vmatprep.mubr.msk.bf16.mxu1 %vm3505_vm4, %v3504_v32  ;;  %3288 = vmatpush3.bf16.msra.mxu1 %v3411_v24 }
 0xf1a   : > { %3289 = vmatprep.subr.bf16.mxu1 %v3504_v32 }
 0xf1d   : > { %3290 = vmatpush3.bf16.msra.mxu1 %v3413_v10 }
 0xf1e   : > { %3303 = vmatprep.subr.bf16.mxu1 %v3504_v32 }
 0xf20   : > { %3292 = vmatmul.mubr.msk.bf16.vlgmr.msra.gmra.mxu1 %vm553_vm5, %v3639_v38 }
 0xf21   : > { %3307 = vmatprep.mubr.msk.bf16.mxu1 %vm3505_vm4, %v3504_v32  ;;  %3304 = vmatpush3.bf16.msra.mxu1 %v3414_v57 }
 0xf22   : > { %3305 = vmatprep.subr.bf16.mxu1 %v3504_v32 }
 0xf25   : > { %3306 = vmatpush3.bf16.msra.mxu1 %v3415_v58 }
 0xf26   : > { %3317 = vmatprep.subr.bf16.mxu1 %v3504_v32 }
 0xf28   : > { %3308 = vmatmul.mubr.msk.bf16.vlgmr.msra.gmra.mxu1 %vm553_vm5, %v3639_v38 }
 0xf29   : > { %3319 = vmatprep.mubr.msk.bf16.mxu1 %vm3505_vm4, %v3504_v32 }
 0xfd8   : > { %v1968_v13 = vpop.f32.mrf.mxu1 }
 0xfd9   : > { %v1974_v26 = vpack.c.bf16 %v1968_v13, %v1968_v13 }
 0xfda   : > { %v3279_v27 = vpop.f32.mrf.mxu1 }
 0xfdb   : > { %3284 = vmatmul.mubr.msk.bf16.vlgmr.msra.gmra.mxu0 %vm725_vm6, %v1974_v26 }
 0xfdc   : > { %v1971_v28 = vpop.f32.mrf.mxu1  ;;  %3296 = vmatpush3.bf16.msra.mxu0 %v3410_v25  ;;  %3299 = vmatprep.mubr.msk.bf16.mxu0 %vm3505_vm4, %v3504_v32 }
 0xfdd   : > { %3297 = vmatprep.subr.bf16.mxu0 %v3504_v32 }
 0xfde   : > { %v3280_v45 = vpop.f32.mrf.mxu1 }
 0xfe0   : > { %3298 = vmatpush3.bf16.msra.mxu0 %v3412_v30  ;;  %v2073_v44 = vpop.f32.mrf.mxu1 }
 0xfe1   : > { %3311 = vmatprep.subr.bf16.mxu0 %v3504_v32  ;;  %v2074_v51 = vadd.f32 %v2073_v44, %v2037_v47 }
 0xfe2   : > { %v3293_v31 = vpop.f32.mrf.mxu1 }
 0xfe3   : > { %3300 = vmatmul.mubr.msk.bf16.vlgmr.msra.gmra.mxu0 %vm553_vm5, %v3639_v38  ;;  %v2080_v56 = vmul.f32 0.35355338, %v2074_v51 }
 0xfe4   : > { %3313 = vmatprep.mubr.msk.bf16.mxu0 %vm3505_vm4, %v3504_v32  ;;  %v3910_v33 = vpop.f32.mrf.mxu1 }
 0xfe5   : > { %v2204_v63 = vpack.c.bf16 %v2080_v56, %v2080_v56  ;;  %v2077_v10 = vadd.f32 %v3910_v33, %v2037_v47 }
 0xfe6   : > { %v3294_v34 = vpop.f32.mrf.mxu1 }
 0xfe7   : > { %v2081_v26 = vmul.f32 0.35355338, %v2077_v10 }
 0xfe8   : > { %v2197_v5 = vpop.f32.mrf.mxu1 }
 0xfe9   : > { %v2361_v27 = vpack.c.bf16 %v2081_v26, %v2081_v26 }
 0xfea   : > { %v3309_v7 = vpop.f32.mrf.mxu1 }
 0xfec   : > { %v2200_v60 = vpop.f32.mrf.mxu1 }
 0xfee   : > { %v3310_v15 = vpop.f32.mrf.mxu1 }
0x109b   : > { %v2012_v36 = vpop.f32.mrf.mxu0 }
0x109c   : > { %v3914_v2 = vadd.f32 %v2012_v36, %v1520_v35 }
0x109d   : > { %v3285_v37 = vpop.f32.mrf.mxu0 }
0x109f   : > { %v2015_v39 = vpop.f32.mrf.mxu0 }
0x10a1   : > { %v3286_v46 = vpop.f32.mrf.mxu0 }
0x10a3   : > { %v2136_v48 = vpop.f32.mrf.mxu0 }
0x10a4   : > { %v2137_v50 = vadd.f32 %v2136_v48, %v2100_v43 }
0x10a5   : > { %v3301_v52 = vpop.f32.mrf.mxu0 }
0x10a6   : > { %v2205_v53 = vpack.c.bf16 %v2137_v50, %v2137_v50 }
0x10a7   : > { %v2139_v54 = vpop.f32.mrf.mxu0 }
0x10a8   : > { %v2211_v55 = vsel %vm725_vm6, %v2205_v53, 0  ;;  %v2140_v21 = vadd.f32 %v2139_v54, %v2100_v43  ;;  %v2515_v54 = vsub.s32 3, %v3651_v40 }
0x10a9   : > { %v3302_v49 = vpop.f32.mrf.mxu0  ;;  %3312 = vmatpush3.bf16.xpose.msra.mxu0 %v2211_v55  ;;  %v3959_v55 = vld [vmem:[%s3612_s16] sm:$0xff] }
0x10aa   : > { %3323 = vmatprep.subr.bf16.mxu0 %v3504_v32  ;;  %v2362_v23 = vpack.c.bf16 %v2140_v21, %v2140_v21  ;;  %v3464_v21 = vld [vmem:[#allocation2 + $0x8] sm:$0xff] }
0x10ac   : > { %v2368_v25 = vsel %vm725_vm6, %v2362_v23, 0 }
0x10b0   : > { %3314 = vmatmul.mubr.msk.bf16.vlgmr.msra.gmra.mxu0 %vm725_vm6, %v2204_v63 }
0x10b1   : > { %3325 = vmatprep.mubr.msk.bf16.mxu0 %vm3505_vm4, %v3504_v32 }
0x1170   : > { %v2247_v59 = vpop.f32.mrf.mxu0 }
0x1171   : > { %v2248_v61 = vadd.f32 %v2247_v59, %v3690_v4  ;;  %v3463_v59 = vld [vmem:[#allocation2] sm:$0xff] }
0x1172   : > { %v3315_v0 = vpop.f32.mrf.mxu0 }
0x1173   : > { %v2253_v1 = vsel %vm725_vm6, %v2248_v61, -inf }
0x1174   : > { %2254 = vmax.xlane.f32.xlu0 %v2253_v1  ;;  %v2250_v3 = vpop.f32.mrf.mxu0 }
0x1176   : > { %v3316_v62 = vpop.f32.mrf.mxu0 }
0x118a   : > { %2160 = vrot.lane.b32.xlu0 %v3700_v29, %s3508_s25  ;;  %v2990_v29 = vld [vmem:[%s3597_s29 + $0xc] sm:$0xf] }
0x118b   : > { %v2318_v19 = vsel %vm787_vm7, %v2990_v29, 0 }
0x118c   : > { %3324 = vmatpush3.bf16.msra.mxu0 %v2318_v19 }
0x118d   : > { %3335 = vmatprep.subr.bf16.mxu0 %v3504_v32 }
0x11fd   : > { %v2255_v9 = vpop.xlane.xlu0 %2254 }
0x11fe   : > { %v2256_v38 = vsub.f32 %v2248_v61, %v2255_v9 }
0x1200   : > { %v2257_v6 = vmul.f32 1.442695, %v2256_v38 }
0x1201   : > { %v2161_v8 = vpop.permute.xlu0 %2160 }
0x1202   : > { %3446 = vpow2.f32 %v2257_v6  ;;  %v2198_v14 = vadd.f32 %v2197_v5, %v2161_v8  ;;  %v2201_v28 = vadd.f32 %v2200_v60, %v2161_v8 }
0x1204   : > { %v2206_v17 = vpack.c.bf16 %v2198_v14, %v2198_v14  ;;  %v2363_v30 = vpack.c.bf16 %v2201_v28, %v2201_v28  ;;  %v3416_v28 = vld [vmem:[%s3602_s12 + $0x8] sm:$0xff]  }
0x1206   : > { %v2269_v18 = vsel %vm787_vm7, %v2206_v17, 0  ;;  %v2426_v33 = vsel %vm787_vm7, %v2363_v30, 0  ;;  %v3418_v30 = vld [vmem:[%s3607_s22 + $0x18] sm:$0xff]  }
0x1207   : > { %3318 = vmatpush3.bf16.msra.mxu1 %v2269_v18 }
0x1208   : > { %3329 = vmatprep.subr.bf16.mxu1 %v3504_v32 }
0x120f   : > { %v3447_v11 = vpop.eup %3446 }
0x1210   : > { %v2259_v12 = vsel %vm725_vm6, %v3447_v11, 0.0 }
0x1211   : > { %2260 = vadd.xlane.f32.xlu1 %v2259_v12 }
0x129a   : > { %v2261_v20 = vpop.xlane.xlu1 %2260 }
0x129b   : > { %3448 = vrcp.f32 %v2261_v20 }
0x12a8   : > { %v3449_v22 = vpop.eup %3448 }
0x12a9   : > { %v2263_v24 = vmul.f32 %v3449_v22, %v3447_v11 }
0x12ab   : > { %v2264_v13 = vpack.c.bf16 %v2263_v24, %v2263_v24 }
0x12ad   : > { %3320 = vmatmul.mubr.msk.bf16.vlgmr.msra.gmra.mxu1 %vm725_vm6, %v2264_v13 }
0x12ae   : > { %3330 = vmatpush3.bf16.xpose.msra.mxu1 %v2368_v25  ;;  %3331 = vmatprep.mubr.msk.bf16.mxu1 %vm3505_vm4, %v3504_v32 }
0x12af   : > { %3341 = vmatprep.subr.bf16.mxu1 %v3504_v32 }
0x12b5   : > { %3332 = vmatmul.mubr.msk.bf16.vlgmr.msra.gmra.mxu1 %vm725_vm6, %v2361_v27 }
0x12b6   : > { %3342 = vmatpush3.bf16.msra.mxu1 %v2318_v19  ;;  %3343 = vmatprep.mubr.msk.bf16.mxu1 %vm3505_vm4, %v3504_v32 }
0x12b7   : > { %3355 = vmatprep.subr.bf16.mxu1 %v3504_v32 }
0x136d   : > { %v2305_v45 = vpop.f32.mrf.mxu1 }
0x136e   : > { %v2311_v44 = vpack.c.bf16 %v2305_v45, %v2305_v45 }
0x136f   : > { %v3321_v31 = vpop.f32.mrf.mxu1 }
0x1370   : > { %3326 = vmatmul.mubr.msk.bf16.vlgmr.msra.gmra.mxu0 %vm725_vm6, %v2311_v44 }
0x1371   : > { %3336 = vmatpush3.bf16.msra.mxu0 %v2426_v33  ;;  %v2308_v34 = vpop.f32.mrf.mxu1  ;;  %3337 = vmatprep.mubr.msk.bf16.mxu0 %vm3505_vm4, %v3504_v32 }
0x1372   : > { %3347 = vmatprep.subr.bf16.mxu0 %v3504_v32 }
0x1373   : > { %v3322_v35 = vpop.f32.mrf.mxu1 }
0x1375   : > { %v2404_v36 = vpop.f32.mrf.mxu1 }
0x1376   : > { %v2405_v37 = vadd.f32 %v2404_v36, %v3690_v4  ;;  %v2516_v4 = vrot.slane %v3959_v55, %v2515_v54  ;;  %v2550_v36 = vsub.s32 4, %v3651_v40 }
0x1377   : > { %v3333_v39 = vpop.f32.mrf.mxu1 }
0x1378   : > { %v2410_v43 = vsel %vm725_vm6, %v2405_v37, -inf }
0x1379   : > { %2411 = vmax.xlane.f32.xlu1 %v2410_v43  ;;  %v2407_v46 = vpop.f32.mrf.mxu1  ;;  %v2551_v43 = vrot.slane %v3959_v55, %v2550_v36 }
0x137a   : > { %v2556_v46 = vsub.s32 5, %v3651_v40 }
0x137b   : > { %v3334_v47 = vpop.f32.mrf.mxu1 }
0x1402   : > { %v2412_v48 = vpop.xlane.xlu1 %2411 }
0x1403   : > { %v2413_v50 = vsub.f32 %v2405_v37, %v2412_v48 }
0x1405   : > { %v2414_v51 = vmul.f32 1.442695, %v2413_v50 }
0x1407   : > { %3450 = vpow2.f32 %v2414_v51  ;;  %v2557_v51 = vrot.slane %v3959_v55, %v2556_v46 }
0x1414   : > { %v3451_v52 = vpop.eup %3450 }
0x1415   : > { %v2416_v53 = vsel %vm725_vm6, %v3451_v52, 0.0 }
0x1416   : > { %2417 = vadd.xlane.f32.xlu1 %v2416_v53 }
0x1430   : > { %v2354_v56 = vpop.f32.mrf.mxu0 }
0x1431   : > { %v2360_v49 = vadd.f32 %v2354_v56, %v3882_v16  ;;  %v3419_v56 = vld [vmem:[%s3607_s22 + $0x10] sm:$0xff]  }
0x1432   : > { %v3327_v63 = vpop.f32.mrf.mxu0 }
0x1433   : > { %v2517_v57 = vadd.f32 %v2516_v4, %v2360_v49  ;;  %v3420_v49 = vld [vmem:[%s3607_s22 + $0x8] sm:$0xff]   ;;  %v3421_v63 = vld [vmem:[%s3607_s22] sm:$0xff]  }
0x1434   : > { %v2357_v58 = vpop.f32.mrf.mxu0 }
0x1435   : > { %v2519_v61 = vadd.f32 %v3463_v59, %v2517_v57  ;;  %v2567_v57 = vsub.s32 6, %v3651_v40 }
0x1436   : > { %v3328_v0 = vpop.f32.mrf.mxu0 }
0x1437   : > { %v2521_v1 = vsel %vm553_vm5, %v2519_v61, 0.0  ;;  %v2568_v58 = vrot.slane %v3959_v55, %v2567_v57 }
0x1438   : > { %2522 = vadd.xlane.f32.xlu1 %v2521_v1 }
0x149f   : > { %v2418_v3 = vpop.xlane.xlu1 %2417 }
0x14a0   : > { %3452 = vrcp.f32 %v2418_v3 }
0x14ad   : > { %v3453_v62 = vpop.eup %3452 }
0x14ae   : > { %v2420_v5 = vmul.f32 %v3453_v62, %v3451_v52 }
0x14b0   : > { %v2421_v7 = vpack.c.bf16 %v2420_v5, %v2420_v5 }
0x14b2   : > { %3338 = vmatmul.mubr.msk.bf16.vlgmr.msra.gmra.mxu0 %vm725_vm6, %v2421_v7 }
0x14b3   : > { %3351 = vmatprep.mubr.msk.bf16.mxu0 %vm3505_vm4, %v3504_v32  ;;  %3348 = vmatpush3.bf16.msra.mxu0 %v3416_v28 }
0x14b4   : > { %3349 = vmatprep.subr.bf16.mxu0 %v3504_v32 }
0x14c1   : > { %v2523_v16 = vpop.xlane.xlu1 %2522 }
0x14c2   : > { %v2528_v9 = vmul.f32 0.03125, %v2523_v16 }
0x14c4   : > { %v2530_v38 = vsub.f32 %v2519_v61, %v2528_v9  ;;  %v2638_v9 = vsub.s32 7, %v3651_v40 }
0x14c6   : > { %v2532_v6 = vmul.f32 %v2530_v38, %v2530_v38 }
0x14c8   : > { %v2534_v11 = vsel %vm553_vm5, %v2532_v6, 0.0 }
0x14c9   : > { %2535 = vadd.xlane.f32.xlu0 %v2534_v11 }
0x1552   : > { %v2536_v45 = vpop.xlane.xlu0 %2535 }
0x1553   : > { %v2540_v44 = vmul.f32 0.03125, %v2536_v45  ;;  %v531_v45 = vld [vmem:[%s3612_s16 + $0x8] sm:$0x3] }
0x1555   : > { %v2542_v31 = vadd.f32 1e-05, %v2540_v44  ;;  %v2740_v44 = vrot.slane %v531_v45, %v539_v41 }
0x1557   : > { %3454 = vrsqrt.f32 %v2542_v31 }
0x1564   : > { %v3455_v37 = vpop.eup %3454 }
0x1565   : > { %v2546_v39 = vmul.f32 %v3455_v37, %v2530_v38 }
0x1567   : > { %v2552_v50 = vmul.f32 %v2551_v43, %v2546_v39 }
0x1569   : > { %v2558_v53 = vadd.f32 %v2557_v51, %v2552_v50 }
0x1572   : > { %v2462_v12 = vpop.f32.mrf.mxu0 }
0x1573   : > { %v2468_v60 = vpack.c.bf16 %v2462_v12, %v2462_v12 }
0x1574   : > { %v3339_v8 = vpop.f32.mrf.mxu0 }
0x1575   : > { %3344 = vmatmul.mubr.msk.bf16.vlgmr.msra.gmra.mxu1 %vm725_vm6, %v2468_v60 }
0x1576   : > { %v2465_v14 = vpop.f32.mrf.mxu0  ;;  %3363 = vmatprep.mubr.msk.bf16.mxu1 %vm3505_vm4, %v3504_v32  ;;  %3356 = vmatpush3.bf16.msra.mxu1 %v3418_v30 }
0x1577   : > { %3357 = vmatprep.subr.bf16.mxu1 %v3504_v32 }
0x1578   : > { %v3340_v15 = vpop.f32.mrf.mxu0 }
0x157a   : > { %3358 = vmatpush3.bf16.msra.mxu1 %v3419_v56 }
0x157b   : > { %3359 = vmatprep.subr.bf16.mxu1 %v3504_v32 }
0x157e   : > { %3360 = vmatpush3.bf16.msra.mxu1 %v3420_v49 }
0x157f   : > { %3361 = vmatprep.subr.bf16.mxu1 %v3504_v32  ;;  %v2639_v32 = vrot.slane %v3959_v55, %v2638_v9 }
0x1582   : > { %3362 = vmatpush3.bf16.msra.mxu1 %v3421_v63 }
0x1635   : > { %v2506_v17 = vpop.f32.mrf.mxu1 }
0x1636   : > { %v2512_v18 = vadd.f32 %v2506_v17, %v3914_v2  ;;  %v3417_v2 = vld [vmem:[%s3602_s12] sm:$0xff]  }
0x1637   : > { %v3345_v29 = vpop.f32.mrf.mxu1  ;;  %3350 = vmatpush3.bf16.msra.mxu0 %v3417_v2 }
0x1638   : > { %v2518_v19 = vadd.f32 %v2516_v4, %v2512_v18 }
0x1639   : > { %v2509_v20 = vpop.f32.mrf.mxu1 }
0x163a   : > { %v2520_v22 = vadd.f32 %v3464_v21, %v2518_v19 }
0x163b   : > { %v3346_v23 = vpop.f32.mrf.mxu1 }
0x163c   : > { %v2524_v24 = vsel %vm553_vm5, %v2520_v22, 0.0 }
0x163d   : > { %2525 = vadd.xlane.f32.xlu1 %v2524_v24 }
0x16c6   : > { %v2526_v10 = vpop.xlane.xlu1 %2525 }
0x16c7   : > { %v2529_v13 = vmul.f32 0.03125, %v2526_v10 }
0x16c9   : > { %v2531_v25 = vsub.f32 %v2520_v22, %v2529_v13 }
0x16cb   : > { %v2533_v26 = vmul.f32 %v2531_v25, %v2531_v25 }
0x16cd   : > { %v2537_v27 = vsel %vm553_vm5, %v2533_v26, 0.0 }
0x16ce   : > { %2538 = vadd.xlane.f32.xlu1 %v2537_v27 }
0x1757   : > { %v2539_v33 = vpop.xlane.xlu1 %2538 }
0x1758   : > { %v2541_v34 = vmul.f32 0.03125, %v2539_v33  ;;  %v2746_v33 = vrot.slane %v531_v45, %v606_v42 }
0x175a   : > { %v2543_v35 = vadd.f32 1e-05, %v2541_v34 }
0x175c   : > { %3456 = vrsqrt.f32 %v2543_v35 }
0x1769   : > { %v3457_v47 = vpop.eup %3456 }
0x176a   : > { %v2547_v48 = vmul.f32 %v3457_v47, %v2531_v25 }
0x176c   : > { %v2553_v52 = vmul.f32 %v2551_v43, %v2547_v48 }
0x176e   : > { %v2559_v54 = vadd.f32 %v2557_v51, %v2553_v52 }
0x1770   : > { %v2560_v4 = vpack.c.bf16 %v2559_v54, %v2558_v53 }
0x1772   : > { %3352 = vmatmul.mubr.msk.bf16.vlgmr.msra.gmra.mxu0 %vm553_vm5, %v2560_v4 }
0x1832   : > { %v2618_v59 = vpop.f32.mrf.mxu0 }
0x1833   : > { %v2619_v0 = vadd.f32 %v2618_v59, %v2568_v58 }
0x1834   : > { %v3353_v61 = vpop.f32.mrf.mxu0 }
0x1835   : > { %v2625_v5 = vmax.f32 %v2619_v0, 0.0 }
0x1836   : > { %v2621_v1 = vpop.f32.mrf.mxu0 }
0x1837   : > { %v2622_v3 = vadd.f32 %v2621_v1, %v2568_v58 }
0x1838   : > { %v3354_v62 = vpop.f32.mrf.mxu0 }
0x1839   : > { %v2626_v7 = vmax.f32 %v2622_v3, 0.0 }
0x183b   : > { %v2627_v16 = vpack.c.bf16 %v2626_v7, %v2625_v5 }
0x183d   : > { %3364 = vmatmul.mubr.msk.bf16.vlgmr.msra.gmra.mxu1 %vm2664_vm8, %v2627_v16 }
0x18fd   : > { %v2702_v38 = vpop.f32.mrf.mxu1 }
0x18fe   : > { %v2703_v6 = vadd.f32 %v2702_v38, %v2639_v32 }
0x18ff   : > { %v3365_v11 = vpop.f32.mrf.mxu1 }
0x1900   : > { %v2709_v12 = vadd.f32 %v2703_v6, %v2558_v53 }
0x1901   : > { %v2705_v60 = vpop.f32.mrf.mxu1 }
0x1902   : > { %v2706_v8 = vadd.f32 %v2705_v60, %v2639_v32  ;;  %v2711_v14 = vsel %vm553_vm5, %v2709_v12, 0.0 }
0x1903   : > { %2712 = vadd.xlane.f32.xlu1 %v2711_v14  ;;  %v3366_v15 = vpop.f32.mrf.mxu1 }
0x1904   : > { %v2710_v17 = vadd.f32 %v2706_v8, %v2559_v54 }
0x1906   : > { %v2714_v18 = vsel %vm553_vm5, %v2710_v17, 0.0 }
0x1907   : > { %2715 = vadd.xlane.f32.xlu1 %v2714_v18 }
0x198c   : > { %v2713_v29 = vpop.xlane.xlu1 %2712 }
0x198d   : > { %v2717_v19 = vmul.f32 0.03125, %v2713_v29 }
0x198f   : > { %v2719_v20 = vsub.f32 %v2709_v12, %v2717_v19 }
0x1990   : > { %v2716_v21 = vpop.xlane.xlu1 %2715 }
0x1991   : > { %v2718_v22 = vmul.f32 0.03125, %v2716_v21  ;;  %v2721_v55 = vmul.f32 %v2719_v20, %v2719_v20 }
0x1993   : > { %v2720_v23 = vsub.f32 %v2710_v17, %v2718_v22  ;;  %v2723_v24 = vsel %vm553_vm5, %v2721_v55, 0.0 }
0x1994   : > { %2724 = vadd.xlane.f32.xlu1 %v2723_v24 }
0x1995   : > { %v2722_v10 = vmul.f32 %v2720_v23, %v2720_v23 }
0x1997   : > { %v2726_v13 = vsel %vm553_vm5, %v2722_v10, 0.0 }
0x1998   : > { %2727 = vadd.xlane.f32.xlu1 %v2726_v13 }
0x1a1d   : > { %v2725_v25 = vpop.xlane.xlu1 %2724 }
0x1a1e   : > { %v2729_v26 = vmul.f32 0.03125, %v2725_v25 }
0x1a20   : > { %v2731_v27 = vadd.f32 1e-05, %v2729_v26 }
0x1a21   : > { %v2728_v28 = vpop.xlane.xlu1 %2727 }
0x1a22   : > { %3458 = vrsqrt.f32 %v2731_v27  ;;  %v2730_v2 = vmul.f32 0.03125, %v2728_v28 }
0x1a24   : > { %v2732_v30 = vadd.f32 1e-05, %v2730_v2 }
0x1a26   : > { %3460 = vrsqrt.f32 %v2732_v30 }
0x1a2f   : > { %v3459_v31 = vpop.eup %3458 }
0x1a30   : > { %v2735_v34 = vmul.f32 %v3459_v31, %v2719_v20 }
0x1a32   : > { %v2741_v35 = vmul.f32 %v2740_v44, %v2735_v34 }
0x1a33   : > { %v3461_v36 = vpop.eup %3460 }
0x1a34   : > { %v2747_v37 = vadd.f32 %v2746_v33, %v2741_v35  ;;  %v2736_v39 = vmul.f32 %v3461_v36, %v2720_v23 }
0x1a36   : > { %2749 = vst.msk [vmem:[#allocation2] sm:$0xff] %vm553_vm5, %v2747_v37  ;;  %v2742_v43 = vmul.f32 %v2740_v44, %v2736_v39  ;;  %2754 = sbr.rel (%p3003_p5) target bundleno = 6716 (0x1a3c), region = 68 }
0x1a38   : > { %v2748_v46 = vadd.f32 %v2746_v33, %v2742_v43 }
0x1a3a   : > { %2750 = vst.msk [vmem:[#allocation2 + $0x8] sm:$0xff] %vm553_vm5, %v2748_v46 }
0x1a3b   : > { %2755 = vst.msk [vmem:[#allocation4] sm:$0xff] %vm553_vm5, %v2747_v37  ;;  %2756 = vst.msk [vmem:[#allocation4 + $0x8] sm:$0xff] %vm553_vm5, %v2748_v46 }
0x1a3c PF: > { %p3371_p6 = scmp.eq.s32.totalorder %s3573_s14, 1  ;;  %s3509_s20 = smov [#allocation4]  }
0x1a3d   : > { %s2763_s23 = sshll.u32 %s3509_s20, 4  ;;  %s2764_s23 = int_to_ptr.vmem [resolvable:$true] %s2763_s23 }
0x1a3e   : > { %s3465_s26 = scalar_lea.vmem %s2764_s23, 256  ;;  %p3472_p10 = scmp.lt.s32.totalorder %s2764_s23, %s2764_s23 }
0x1a3f   : > { %p3466_p7 = scmp.ne.s32.totalorder %s2764_s23, %s3465_s26  ;;  %p3473_p11 = scmp.lt.s32.totalorder %s3465_s26, %s3465_s26 }
0x1a41   : > { %p3467_p8 = pnand %p3466_p7, %p3371_p6  ;;  %p3474_p12 = por %p3473_p11, %p3472_p10 }
0x1a43   : > { %p3468_p9 = pneg %p3467_p8 }
0x1a45   : > { %p3475_p13 = pnand %p3474_p12, %p3468_p9 }
0x1a47   : > { %3478 = shalt.err (!%p3475_p13)
}
0x1a48   : > { %s3510_s29 = smov 128   ;;  %s3511_s12 = smov 8  }
0x1a49   : > { %3368 = dma.vmem_to_hbm [thread:$0]  (%p3371_p6), %s2764_s23, 256, %s4032_s10, [#allocation5], %s3510_s29, %s3510_s29, %s3511_s12  }
0x1a4a   : > { %3494 = dma.done.wait (%p3371_p6), [#allocation5], 256  }
0x1a4b   : > { %3496 = vsyncadd (%p3371_p6), [#allocation5], 4294967040 }
0x1a4c PF: > { %s21_s13 = sadd.s32 1, %s3499_s13  }
0x1a4d   : > { %p18_p0 = scmp.ge.s32.totalorder %s21_s13, 4  }
0x1a4f   :  { %20 = sbr.rel (!%p18_p0) target bundleno = 3 (0x3), region = 125 }
0x1a54   :  { %2779 = vsyncpa [#allocation5], 1 }
0x1a55   :  { %2781 = vsyncpa [#allocation5 + $0x1], 1 }

</bundles_post_ra>
